<compile_context>
chip_gen: v6e
topology: v6e:2x2x1
jax: 0.10.0
libtpu: 0.0.40
codegen_flags: <defaults>
</compile_context>

<pallas_src>
import functools

import jax
import jax.numpy as jnp
from jax import lax
from jax.experimental import pallas as pl
from jax.experimental.pallas import tpu as pltpu


# ---------------- fused Pallas kernel ----------------

def _attn_fused_kernel(x_ref, xp_ref, wt_ref, wpg_ref, wo_ref, gamma_ref,
                       out_ref, phi_s, gproj_s, *, np_pool, use_bf16_exp):
    # x_ref    : (C, tq)        f32   query tile of x, channel-major (lane-dense)
    # xp_ref   : (C, 4*Np)      bf16  4 pooling phases, contiguous on lanes
    # wt_ref   : (C8, C)        bf16  theta weights
    # wpg_ref  : (C8+C2, C)     bf16  stacked [w_phi; w_g]
    # wo_ref   : (C, C2)        bf16  output-conv weights
    # gamma_ref: (1,)           f32   SMEM scalar
    # out_ref  : (C, tq)        f32
    # phi_s    : (C8, Np)       bf16  scratch (pooled phi, per batch)
    # gproj_s  : (C+8, Np)      bf16  scratch (w_o @ pooled g, plus ones rows)
    i = pl.program_id(1)
    c8 = wt_ref.shape[0]
    c = wo_ref.shape[0]

    # Once per batch: one long-N projection matmul over all 4 pooling phases,
    # elementwise max over Np-wide lane slices, reassociated output weights.
    @pl.when(i == 0)
    def _():
        pg_all = jnp.dot(wpg_ref[...], xp_ref[...],
                         preferred_element_type=jnp.float32)        # (C8+C2, 4Np)
        pg = jnp.maximum(
            jnp.maximum(pg_all[:, 0:np_pool], pg_all[:, np_pool:2 * np_pool]),
            jnp.maximum(pg_all[:, 2 * np_pool:3 * np_pool],
                        pg_all[:, 3 * np_pool:4 * np_pool]))         # (C8+C2, Np)
        phi_s[...] = pg[:c8, :].astype(jnp.bfloat16)
        gproj = jnp.dot(wo_ref[...], pg[c8:, :].astype(jnp.bfloat16),
                        preferred_element_type=jnp.float32)          # (C, Np)
        gproj_s[0:c, :] = gproj.astype(jnp.bfloat16)
        # Ones rows: row `c` of (gproj_ext . p^T) is the softmax row-sum l,
        # delivered directly in (1, tq) lane layout (deferred normalization).
        gproj_s[c:, :] = jnp.ones((gproj_s.shape[0] - c, np_pool), jnp.bfloat16)

    # Per query tile.
    x = x_ref[...]                                                   # (C, tq) f32
    theta = jnp.dot(wt_ref[...], x.astype(jnp.bfloat16),
                    preferred_element_type=jnp.float32)              # (C8, tq)
    # scores[n, m] = sum_c theta[c, n] * phi[c, m]   (theta is the small operand,
    # so any layout fixup the compiler inserts stays on (C8, tq)).
    s = lax.dot_general(theta.astype(jnp.bfloat16), phi_s[...],
                        (((0,), (0,)), ((), ())),
                        preferred_element_type=jnp.float32)          # (tq, Np)
    s = s - jnp.max(s, axis=-1, keepdims=True)
    if use_bf16_exp:          # v6e/v7x: bf16 EUP path
        p = jnp.exp(s.astype(jnp.bfloat16))
    else:                     # v5e and older: no bf16 VPU/EUP
        p = jnp.exp(s).astype(jnp.bfloat16)
    # o_ext[c, n] = sum_m gproj_ext[c, m] * p[n, m]; last rows carry l[n].
    o_ext = lax.dot_general(gproj_s[...], p,
                            (((1,), (1,)), ((), ())),
                            preferred_element_type=jnp.float32)      # (C+8, tq)
    o = o_ext[0:c, :]
    inv_l = pl.reciprocal(o_ext[c:c + 1, :], approx=True)            # (1, tq)
    out_ref[...] = ((gamma_ref[0] * inv_l) * o + x).astype(out_ref.dtype)


# ---------------- wrapper helpers ----------------

def _vmem_capacity_bytes():
    try:
        return int(pltpu.get_tpu_info().vmem_capacity_bytes)
    except Exception:
        return 128 * 1024 * 1024   # v5e/v6e default


def _has_bf16_vpu():
    # v6e / v7x have bf16 VPU+EUP; v5e and older do not.
    try:
        kind = jax.devices()[0].device_kind.lower()
    except Exception:
        return True
    return not any(tag in kind for tag in ("v2", "v3", "v4", "v5"))


# ---------------- wrapper ----------------

def attention_pallas(x, w_theta, w_phi, w_g, w_o, gamma, *, tq=None,
                     single_buffer_resident=False):
    """x: (B, C, H, W) float32 (NCHW). Weights are (C_out, C_in) 1x1-conv matrices."""
    B, C, H, W = x.shape
    assert C % 8 == 0 and H % 2 == 0 and W % 2 == 0
    C8, C2 = C // 8, C // 2
    N = H * W
    Np = N // 4

    vmem_cap = _vmem_capacity_bytes()

    if tq is None:  # query tile: lane-dense (mult of 128), divides N, VMEM-aware
        tq_cap = 256 if (Np >= 512 and vmem_cap <= 64 * 2**20) or Np >= 1024 else 512
        tq = N
        for cand in (512, 256, 128):
            if cand <= tq_cap and N % cand == 0:
                tq = cand
                break
    assert N % tq == 0

    # VMEM budget from actual buffer math (double-buffered tiles + scratch +
    # softmax-temporary headroom), clamped to the chip's capacity.
    est = (2 * 2 * C * tq * 4                              # x-in + out tiles (f32, 2-buf)
           + 2 * C * 4 * Np * 2                            # xp (bf16, 2-buf)
           + 2 * 2 * (C8 * C + (C8 + C2) * C + C * C2)     # weights (bf16, 2-buf)
           + (C8 + C + 8) * Np * 2                         # bf16 scratch
           + 6 * tq * Np * 4)                              # softmax temps / spills
    vmem_limit = min(int(vmem_cap * 0.9), max(32 * 2**20, 2 * est))

    # Free reshape: same bytes as NCHW, channel-major (C, N) per batch.
    x_flat = x.reshape(B, C, N)
    # Pooling phases, emitted directly in the (B, C, 4*Np) layout the kernel
    # wants (single fused transpose+cast).  Phase q = 2*a + b holds pixels
    # (2i+a, 2j+b); max_pool2d(conv1x1(x)) == max_q conv1x1(x_phase_q).
    xp = (x.reshape(B, C, H // 2, 2, W // 2, 2)
            .transpose(0, 1, 3, 5, 2, 4)
            .reshape(B, C, 4 * Np)
            .astype(jnp.bfloat16))
    wt = w_theta.astype(jnp.bfloat16)
    wpg = jnp.concatenate([w_phi, w_g], axis=0).astype(jnp.bfloat16)
    wo = w_o.astype(jnp.bfloat16)
    gamma_arr = jnp.asarray(gamma, jnp.float32).reshape(1)

    def resident(block_shape, index_map):
        # Resident blocks (fetched at most once per batch).  Optionally single
        # buffer them for extra VMEM headroom (useful on v7x / large maps).
        if single_buffer_resident:
            try:
                return pl.BlockSpec(block_shape, index_map,
                                    pipeline_mode=pl.Buffered(1))
            except TypeError:
                pass
        return pl.BlockSpec(block_shape, index_map)

    kernel = functools.partial(_attn_fused_kernel, np_pool=Np,
                               use_bf16_exp=_has_bf16_vpu())

    # TODO(synk): for B < number of TensorCores (v7x megacore) the "parallel"
    # batch axis leaves a core idle; splitting the query-tile axis across cores
    # (sharing phi/gproj via VMEM_SHARED) is the remaining lever.
    out_flat = pl.pallas_call(
        kernel,
        out_shape=jax.ShapeDtypeStruct((B, C, N), x.dtype),
        grid_spec=pltpu.PrefetchScalarGridSpec(
            num_scalar_prefetch=0,
            grid=(B, N // tq),
            in_specs=[
                pl.BlockSpec((None, C, tq), lambda b, i: (b, 0, i)),   # x tile
                resident((None, C, 4 * Np), lambda b, i: (b, 0, 0)),   # phases
                resident((C8, C), lambda b, i: (0, 0)),                # w_theta
                resident((C8 + C2, C), lambda b, i: (0, 0)),           # [w_phi; w_g]
                resident((C, C2), lambda b, i: (0, 0)),                # w_o
                pl.BlockSpec(memory_space=pltpu.MemorySpace.SMEM),     # gamma
            ],
            out_specs=pl.BlockSpec((None, C, tq), lambda b, i: (b, 0, i)),
            scratch_shapes=[
                pltpu.VMEM((C8, Np), jnp.bfloat16),      # pooled phi
                pltpu.VMEM((C + 8, Np), jnp.bfloat16),   # gproj + ones rows
            ],
        ),
        input_output_aliases={0: 0},  # x_flat is dead after the call inside jit
        compiler_params=pltpu.CompilerParams(
            dimension_semantics=("parallel", "arbitrary"),
            vmem_limit_bytes=vmem_limit,
        ),
    )(x_flat, xp, wt, wpg, wo, gamma_arr)

    return out_flat.reshape(B, C, H, W)


# ---------------- pure-JAX f32 reference (module semantics) ----------------

def attention_ref(x, w_theta, w_phi, w_g, w_o, gamma):
    B, C, H, W = x.shape
    C8, C2 = C // 8, C // 2

    def conv1(z, w):  # 1x1 conv, no bias
        return jnp.einsum('bchw,oc->bohw', z, w)

    def pool(z):
        Bz, Cz, Hz, Wz = z.shape
        z = z.reshape(Bz, Cz, Hz // 2, 2, Wz // 2, 2)
        return jnp.max(z, axis=(3, 5))

    theta = conv1(x, w_theta).reshape(B, C8, H * W)
    phi = pool(conv1(x, w_phi)).reshape(B, C8, H * W // 4)
    g = pool(conv1(x, w_g)).reshape(B, C2, H * W // 4)
    beta = jax.nn.softmax(jnp.einsum('bcn,bcm->bnm', theta, phi), axis=-1)
    o_inner = jnp.einsum('bcm,bnm->bcn', g, beta).reshape(B, C2, H, W)
    o = conv1(o_inner, w_o)
    return gamma * o + x


if __name__ == "__main__":
    # ch must be divisible by 8 (theta/phi have ch//8 channels).
    B, C, H, W = 2, 64, 32, 32
    key = jax.random.PRNGKey(0)
    k1, k2, k3, k4, k5 = jax.random.split(key, 5)
    x = jax.random.normal(k1, (B, C, H, W), jnp.float32)
    # Conv2d(Cin, Cout, kernel_size=1, bias=False) weights squeezed to (Cout, Cin)
    w_theta = 0.1 * jax.random.normal(k2, (C // 8, C), jnp.float32)
    w_phi = 0.1 * jax.random.normal(k3, (C // 8, C), jnp.float32)
    w_g = 0.1 * jax.random.normal(k4, (C // 2, C), jnp.float32)
    w_o = 0.1 * jax.random.normal(k5, (C, C // 2), jnp.float32)
    # Module __init__ sets gamma = 0.0 (output would equal x); use a nonzero
    # value so the attention path is actually exercised / verified.
    gamma = jnp.float32(0.5)

    fn = jax.jit(attention_pallas)
    out = fn(x, w_theta, w_phi, w_g, w_o, gamma)
    jax.block_until_ready(out)

    ref = attention_ref(x, w_theta, w_phi, w_g, w_o, gamma)
    max_err = float(jnp.max(jnp.abs(out - ref)))
    assert out.shape == x.shape and out.dtype == x.dtype
    # Tolerance sized for bf16 MXU operands, bf16 exp (on v6e/v7x) and the
    # approx-reciprocal softmax denominator; structural bugs (wrong pooling /
    # transpose / softmax axis) would give O(1) mismatches.
    assert jnp.allclose(out, ref, atol=1e-1, rtol=5e-2), f"max abs err = {max_err}"
    print("KERNEL_OK")
</pallas_src>

<mosaic_0001>
module attributes {stable_mosaic.version = 11 : i64} {
  func.func @_attn_fused_kernel(%arg0: i32, %arg1: i32, %arg2: memref<1x64x512xf32, #tpu.memory_space<vmem>>, %arg3: memref<1x64x1024xbf16, #tpu.memory_space<vmem>>, %arg4: memref<8x64xbf16, #tpu.memory_space<vmem>>, %arg5: memref<40x64xbf16, #tpu.memory_space<vmem>>, %arg6: memref<64x32xbf16, #tpu.memory_space<vmem>>, %arg7: memref<1xf32, #tpu.memory_space<smem>>, %arg8: memref<1x64x512xf32, #tpu.memory_space<vmem>>, %arg9: memref<8x256xbf16, #tpu.memory_space<vmem>>, %arg10: memref<72x256xbf16, #tpu.memory_space<vmem>>) attributes {dimension_semantics = [#tpu.dimension_semantics<parallel>, #tpu.dimension_semantics<arbitrary>], iteration_bounds = array<i64: 2, 2>, scalar_prefetch = 0 : i64, scratch_operands = 2 : i64, tpu.core_type = #tpu.core_type<tc>, window_params = [{transform_indices = @transform_0, window_bounds = array<i64: 1, 64, 512>}, {transform_indices = @transform_1, window_bounds = array<i64: 1, 64, 1024>}, {pipeline_mode = #tpu.pipeline_mode<synchronous>, transform_indices = @transform_2, window_bounds = array<i64: 8, 64>}, {pipeline_mode = #tpu.pipeline_mode<synchronous>, transform_indices = @transform_3, window_bounds = array<i64: 40, 64>}, {pipeline_mode = #tpu.pipeline_mode<synchronous>, transform_indices = @transform_4, window_bounds = array<i64: 64, 32>}, {transform_indices = @transform_5, window_bounds = array<i64: 1>}, {transform_indices = @transform_6, window_bounds = array<i64: 1, 64, 512>}]} {
    %c0_i32 = arith.constant 0 : i32
    %0 = arith.cmpi eq, %arg1, %c0_i32 : i32
    %1 = arith.extui %0 : i1 to i32
    %c0_i32_0 = arith.constant 0 : i32
    %2 = arith.cmpi ne, %1, %c0_i32_0 : i32
    scf.if %2 {
      %c0_16 = arith.constant 0 : index
      %c0_17 = arith.constant 0 : index
      %31 = vector.load %arg5[%c0_16, %c0_17] : memref<40x64xbf16, #tpu.memory_space<vmem>>, vector<40x64xbf16>
      %c0_18 = arith.constant 0 : index
      %c0_19 = arith.constant 0 : index
      %c0_20 = arith.constant 0 : index
      %32 = vector.load %arg3[%c0_18, %c0_19, %c0_20] : memref<1x64x1024xbf16, #tpu.memory_space<vmem>>, vector<1x64x1024xbf16>
      %33 = vector.shape_cast %32 : vector<1x64x1024xbf16> to vector<64x1024xbf16>
      %cst_21 = arith.constant dense<0.000000e+00> : vector<40x1024xf32>
      %34 = tpu.matmul %31, %33, %cst_21 {dimension_numbers = #tpu.dot_dimension_numbers<[1], [0], [0], [1], [0, 0, 1, 1], [], []>} : vector<40x64xbf16>, vector<64x1024xbf16>, vector<40x1024xf32> -> vector<40x1024xf32>
      %35 = vector.extract_strided_slice %34 {offsets = [0, 0], sizes = [40, 256], strides = [1, 1]} : vector<40x1024xf32> to vector<40x256xf32>
      %36 = vector.extract_strided_slice %34 {offsets = [0, 256], sizes = [40, 256], strides = [1, 1]} : vector<40x1024xf32> to vector<40x256xf32>
      %37 = arith.maximumf %35, %36 : vector<40x256xf32>
      %38 = vector.extract_strided_slice %34 {offsets = [0, 512], sizes = [40, 256], strides = [1, 1]} : vector<40x1024xf32> to vector<40x256xf32>
      %39 = vector.extract_strided_slice %34 {offsets = [0, 768], sizes = [40, 256], strides = [1, 1]} : vector<40x1024xf32> to vector<40x256xf32>
      %40 = arith.maximumf %38, %39 : vector<40x256xf32>
      %41 = arith.maximumf %37, %40 : vector<40x256xf32>
      %42 = vector.extract_strided_slice %41 {offsets = [0, 0], sizes = [8, 256], strides = [1, 1]} : vector<40x256xf32> to vector<8x256xf32>
      %43 = arith.truncf %42 : vector<8x256xf32> to vector<8x256xbf16>
      %c0_22 = arith.constant 0 : index
      %c0_23 = arith.constant 0 : index
      %44 = vector.load %arg9[%c0_22, %c0_23] : memref<8x256xbf16, #tpu.memory_space<vmem>>, vector<8x256xbf16>
      tpu.vector_store %arg9[%c0_22, %c0_23], %43 {strides = array<i32>} : memref<8x256xbf16, #tpu.memory_space<vmem>>, vector<8x256xbf16>,
      %c0_24 = arith.constant 0 : index
      %c0_25 = arith.constant 0 : index
      %45 = vector.load %arg6[%c0_24, %c0_25] : memref<64x32xbf16, #tpu.memory_space<vmem>>, vector<64x32xbf16>
      %46 = vector.extract_strided_slice %41 {offsets = [8, 0], sizes = [32, 256], strides = [1, 1]} : vector<40x256xf32> to vector<32x256xf32>
      %47 = arith.truncf %46 : vector<32x256xf32> to vector<32x256xbf16>
      %cst_26 = arith.constant dense<0.000000e+00> : vector<64x256xf32>
      %48 = tpu.matmul %45, %47, %cst_26 {dimension_numbers = #tpu.dot_dimension_numbers<[1], [0], [0], [1], [0, 0, 1, 1], [], []>} : vector<64x32xbf16>, vector<32x256xbf16>, vector<64x256xf32> -> vector<64x256xf32>
      %49 = arith.truncf %48 : vector<64x256xf32> to vector<64x256xbf16>
      %c0_27 = arith.constant 0 : index
      %c0_28 = arith.constant 0 : index
      %50 = vector.load %arg10[%c0_27, %c0_28] : memref<72x256xbf16, #tpu.memory_space<vmem>>, vector<64x256xbf16>
      tpu.vector_store %arg10[%c0_27, %c0_28], %49 {strides = array<i32>} : memref<72x256xbf16, #tpu.memory_space<vmem>>, vector<64x256xbf16>,
      %cst_29 = arith.constant 1.000000e+00 : bf16
      %51 = vector.broadcast %cst_29 : bf16 to vector<8x256xbf16>
      %c64 = arith.constant 64 : index
      %c0_30 = arith.constant 0 : index
      %52 = vector.load %arg10[%c64, %c0_30] : memref<72x256xbf16, #tpu.memory_space<vmem>>, vector<8x256xbf16>
      tpu.vector_store %arg10[%c64, %c0_30], %51 {strides = array<i32>} : memref<72x256xbf16, #tpu.memory_space<vmem>>, vector<8x256xbf16>,
    } else {
    }
    %c0 = arith.constant 0 : index
    %c0_1 = arith.constant 0 : index
    %c0_2 = arith.constant 0 : index
    %3 = vector.load %arg2[%c0, %c0_1, %c0_2] : memref<1x64x512xf32, #tpu.memory_space<vmem>>, vector<1x64x512xf32>
    %4 = vector.shape_cast %3 : vector<1x64x512xf32> to vector<64x512xf32>
    %c0_3 = arith.constant 0 : index
    %c0_4 = arith.constant 0 : index
    %5 = vector.load %arg4[%c0_3, %c0_4] : memref<8x64xbf16, #tpu.memory_space<vmem>>, vector<8x64xbf16>
    %6 = arith.truncf %4 : vector<64x512xf32> to vector<64x512xbf16>
    %cst = arith.constant dense<0.000000e+00> : vector<8x512xf32>
    %7 = tpu.matmul %5, %6, %cst {dimension_numbers = #tpu.dot_dimension_numbers<[1], [0], [0], [1], [0, 0, 1, 1], [], []>} : vector<8x64xbf16>, vector<64x512xbf16>, vector<8x512xf32> -> vector<8x512xf32>
    %8 = arith.truncf %7 : vector<8x512xf32> to vector<8x512xbf16>
    %c0_5 = arith.constant 0 : index
    %c0_6 = arith.constant 0 : index
    %9 = vector.load %arg9[%c0_5, %c0_6] : memref<8x256xbf16, #tpu.memory_space<vmem>>, vector<8x256xbf16>
    %cst_7 = arith.constant dense<0.000000e+00> : vector<512x256xf32>
    %10 = tpu.matmul %8, %9, %cst_7 {dimension_numbers = #tpu.dot_dimension_numbers<[0], [0], [1], [1], [0, 1, 1, 1], [], []>} : vector<8x512xbf16>, vector<8x256xbf16>, vector<512x256xf32> -> vector<512x256xf32>
    %cst_8 = arith.constant dense<0xFF800000> : vector<512xf32>
    %11 = vector.multi_reduction <maximumf>, %10, %cst_8 [1] : vector<512x256xf32> to vector<512xf32>
    %12 = vector.shape_cast %11 : vector<512xf32> to vector<512x1xf32>
    %13 = vector.broadcast %12 : vector<512x1xf32> to vector<512x256xf32>
    %14 = arith.subf %10, %13 : vector<512x256xf32>
    %15 = arith.truncf %14 : vector<512x256xf32> to vector<512x256xbf16>
    %16 = math.exp %15 : vector<512x256xbf16>
    %c0_9 = arith.constant 0 : index
    %c0_10 = arith.constant 0 : index
    %17 = vector.load %arg10[%c0_9, %c0_10] : memref<72x256xbf16, #tpu.memory_space<vmem>>, vector<72x256xbf16>
    %cst_11 = arith.constant dense<0.000000e+00> : vector<72x512xf32>
    %18 = tpu.matmul %17, %16, %cst_11 {dimension_numbers = #tpu.dot_dimension_numbers<[1], [1], [0], [0], [0, 0, 1, 0], [], []>} : vector<72x256xbf16>, vector<512x256xbf16>, vector<72x512xf32> -> vector<72x512xf32>
    %19 = vector.extract_strided_slice %18 {offsets = [0, 0], sizes = [64, 512], strides = [1, 1]} : vector<72x512xf32> to vector<64x512xf32>
    %20 = vector.extract_strided_slice %18 {offsets = [64, 0], sizes = [1, 512], strides = [1, 1]} : vector<72x512xf32> to vector<1x512xf32>
    %21 = tpu.reciprocal %20 {approx = true} : vector<1x512xf32> -> vector<1x512xf32>
    %c0_12 = arith.constant 0 : index
    %22 = memref.load %arg7[%c0_12] : memref<1xf32, #tpu.memory_space<smem>>
    %23 = vector.broadcast %22 : f32 to vector<1x512xf32>
    %24 = arith.mulf %23, %21 : vector<1x512xf32>
    %25 = vector.broadcast %24 : vector<1x512xf32> to vector<64x512xf32>
    %26 = arith.mulf %25, %19 : vector<64x512xf32>
    %27 = arith.addf %26, %4 : vector<64x512xf32>
    %c0_13 = arith.constant 0 : index
    %c0_14 = arith.constant 0 : index
    %c0_15 = arith.constant 0 : index
    %28 = vector.load %arg8[%c0_13, %c0_14, %c0_15] : memref<1x64x512xf32, #tpu.memory_space<vmem>>, vector<1x64x512xf32>
    %29 = vector.shape_cast %28 : vector<1x64x512xf32> to vector<64x512xf32>
    %30 = vector.shape_cast %27 : vector<64x512xf32> to vector<1x64x512xf32>
    tpu.vector_store %arg8[%c0_13, %c0_14, %c0_15], %30 {strides = array<i32>} : memref<1x64x512xf32, #tpu.memory_space<vmem>>, vector<1x64x512xf32>,
    return
  }
  func.func @transform_0(%arg0: i32, %arg1: i32) -> (i32, i32, i32) {
    %c0_i32 = arith.constant 0 : i32
    %c0_i32_0 = arith.constant 0 : i32
    return %arg0, %c0_i32, %arg1 : i32, i32, i32
  }
  func.func @transform_1(%arg0: i32, %arg1: i32) -> (i32, i32, i32) {
    %c0_i32 = arith.constant 0 : i32
    %c0_i32_0 = arith.constant 0 : i32
    %c0_i32_1 = arith.constant 0 : i32
    return %arg0, %c0_i32, %c0_i32_0 : i32, i32, i32
  }
  func.func @transform_2(%arg0: i32, %arg1: i32) -> (i32, i32) {
    %c0_i32 = arith.constant 0 : i32
    %c0_i32_0 = arith.constant 0 : i32
    %c0_i32_1 = arith.constant 0 : i32
    return %c0_i32, %c0_i32_0 : i32, i32
  }
  func.func @transform_3(%arg0: i32, %arg1: i32) -> (i32, i32) {
    %c0_i32 = arith.constant 0 : i32
    %c0_i32_0 = arith.constant 0 : i32
    %c0_i32_1 = arith.constant 0 : i32
    return %c0_i32, %c0_i32_0 : i32, i32
  }
  func.func @transform_4(%arg0: i32, %arg1: i32) -> (i32, i32) {
    %c0_i32 = arith.constant 0 : i32
    %c0_i32_0 = arith.constant 0 : i32
    %c0_i32_1 = arith.constant 0 : i32
    return %c0_i32, %c0_i32_0 : i32, i32
  }
  func.func @transform_5(%arg0: i32, %arg1: i32) -> i32 {
    %c0_i32 = arith.constant 0 : i32
    %c0_i32_0 = arith.constant 0 : i32
    return %c0_i32 : i32
  }
  func.func @transform_6(%arg0: i32, %arg1: i32) -> (i32, i32, i32) {
    %c0_i32 = arith.constant 0 : i32
    %c0_i32_0 = arith.constant 0 : i32
    return %arg0, %c0_i32, %arg1 : i32, i32, i32
  }
}

</mosaic_0001>

<bundles_post_ra>
// kernel: attention_pallas.1
= control target key start
LH: loop header
LB: loop body
LE: loop exit
PB: predicated region body
PF: predicated region fallthrough
CT: control target
= control target key end

     0   :  { %s4395_s0 = inlined_call_operand.vmem [shape: f32[2,64,1024], index: 0, kind: input, shape index: {}, may-alias: {0,6}]   ;;  %s4396_s1 = inlined_call_operand.vmem [shape: bf16[2,64,1024], index: 1, kind: input, shape index: {}]   ;;  %s4397_s2 = inlined_call_operand.vmem [shape: bf16[8,64], index: 2, kind: input, shape index: {}]   ;;  %s4398_s3 = inlined_call_operand.vmem [shape: bf16[40,64], index: 3, kind: input, shape index: {}]   ;;  %s4399_s4 = inlined_call_operand.vmem [shape: bf16[64,32], index: 4, kind: input, shape index: {}]   ;;  %s4400_s5 = inlined_call_operand.<no memory space> [shape: f32[1], index: 5, kind: input, shape index: {}]   ;;  %s4401_s6 = inlined_call_operand.vmem [shape: f32[2,64,1024], index: 6, kind: output, shape index: {}, may-alias: {0,6}]  }
   0x1   :  { %11 = sst [smem:[#allocation4]] %s4400_s5 }
   0x2   :  { %s3308_s23 = smov 0   ;;  %s3310_s24 = smov 0  }
   0x3   :  { %s3312_s25 = smov 0   ;;  %s3314_s26 = smov 0  }
   0x4   :  { %s3316_s27 = smov 0   ;;  %s3318_s28 = smov 0  }
   0x5   :  { %s3320_s29 = smov 0  }
   0x6 LB: > { %s26_s5 = sadd.s32 1, %s3257_s27  ;;  %s29_s30 = sadd.s32 1, %s3261_s28  ;;  %s3265_s29 = sphi %s3320_s29, %s17_s29   ;;  %s3261_s28 = sphi %s3318_s28, %s4600_s28   ;;  %s3257_s27 = sphi %s3316_s27, %s4599_s27   ;;  %s3253_s26 = sphi %s3314_s26, %s4598_s26   ;;  %s3249_s25 = sphi %s3312_s25, %s4597_s25   ;;  %s3245_s24 = sphi %s3310_s24, %s4596_s24   ;;  %s3241_s23 = sphi %s3308_s23, %s4595_s23  }
   0x7   : > { %p27_p0 = scmp.ge.s32.totalorder %s26_s5, 2  ;;  %s2812_s7 = sadd.s32 4294967295, %s3265_s29  }
   0x8   : > { %p45_p1 = scmp.ne.s32.totalorder %s3245_s24, %s3241_s23  ;;  %p46_p2 = scmp.eq.s32.totalorder %s3265_s29, 0 }
   0x9   : > { %s4602_s5 = smov (%p27_p0, %s26_s5), 0  ;;  %s4604_s30 = smov (!%p27_p0, %s29_s30), %s3261_s28 }
   0xa   : > { %p31_p3 = scmp.ge.s32.totalorder %s4604_s30, 2  ;;  %p187_p4 = scmp.eq.s32.totalorder %s2812_s7, 3 }
   0xb   : > { %s34_s8 = ssub.s32 %s3257_s27, %s4602_s5  ;;  %p47_p5 = por %p46_p2, %p45_p1 }
   0xc   : > { %s4606_s30 = smov (%p31_p3, %s4604_s30), 0  ;;  %p3356_p6 = por %p187_p4, %p45_p1 }
   0xd   : > { %s33_s10 = ssub.s32 %s3261_s28, %s4606_s30  ;;  %s38_s12 = sadd.s32 1, %s3245_s24 }
   0xe   : > { %s35_s11 = sor.u32 %s34_s8, %s33_s10  ;;  %p2815_p8 = scmp.ge.s32.totalorder %s3265_s29, 4 }
   0xf   : > { %p36_p7 = scmp.eq.s32.totalorder %s35_s11, 0 }
  0x10   : > { %221 = sbr.rel (%p2815_p8) target bundleno = 44 (0x2c), region = 32 }
  0x11   : > { %s3364_s13 = scalar_select %p36_p7, %s3245_s24, %s38_s12  }
  0x15   : > { %224 = sbr.rel (!%p47_p5) target bundleno = 44 (0x2c), region = 36  ;;  %s226_s14 = sand.u32 (%p47_p5), 1, %s3245_s24  }
  0x16   : > { %s2817_s15 = sshll.u32 (%p47_p5), %s3257_s27, 2  ;;  %s2816_s16 = sshll.u32 (%p47_p5), %s226_s14, 8 }
  0x17   : > { %s2818_s17 = sshll.u32 (%p47_p5), %s3261_s28, 6  ;;  %s3378_s7 = scalar_lea.vmem (%p47_p5), [#allocation5], %s2816_s16 }
  0x18   : > { %s231_s18 = sadd.s32 (%p47_p5), %s2818_s17, %s2817_s15 }
  0x19   : > { %s2819_s19 = sshll.u32 (%p47_p5), %s231_s18, 3 }
  0x1a   : > { %s3373_s22 = scalar_lea.vmem %s4395_s0, %s2819_s19 }
  0x1b   : > { %v246_v0 = vld [vmem:[%s3373_s22] sm:$0xff]  ;;  %v248_v1 = vld [vmem:[%s3373_s22 + $0x8] sm:$0xff]  ;;  %v250_v2 = vld [vmem:[%s3373_s22 + $0x10] sm:$0xff] }
  0x1c   : > { %247 = vst [vmem:[%s3378_s7] sm:$0xff] %v246_v0  ;;  %249 = vst [vmem:[%s3378_s7 + $0x8] sm:$0xff] %v248_v1  ;;  %v252_v3 = vld [vmem:[%s3373_s22 + $0x18] sm:$0xff]  ;;  %v254_v4 = vld [vmem:[%s3373_s22 + $0x40] sm:$0xff] }
  0x1d   : > { %251 = vst [vmem:[%s3378_s7 + $0x10] sm:$0xff] %v250_v2  ;;  %v256_v5 = vld [vmem:[%s3373_s22 + $0x48] sm:$0xff]  ;;  %253 = vst [vmem:[%s3378_s7 + $0x18] sm:$0xff] %v252_v3  ;;  %v258_v6 = vld [vmem:[%s3373_s22 + $0x50] sm:$0xff] }
  0x1e   : > { %255 = vst [vmem:[%s3378_s7 + $0x20] sm:$0xff] %v254_v4  ;;  %257 = vst [vmem:[%s3378_s7 + $0x28] sm:$0xff] %v256_v5  ;;  %v260_v7 = vld [vmem:[%s3373_s22 + $0x58] sm:$0xff]  ;;  %v262_v8 = vld [vmem:[%s3373_s22 + $0x80] sm:$0xff] }
  0x1f   : > { %259 = vst [vmem:[%s3378_s7 + $0x30] sm:$0xff] %v258_v6  ;;  %261 = vst [vmem:[%s3378_s7 + $0x38] sm:$0xff] %v260_v7  ;;  %v264_v9 = vld [vmem:[%s3373_s22 + $0x88] sm:$0xff]  ;;  %v266_v10 = vld [vmem:[%s3373_s22 + $0x90] sm:$0xff] }
  0x20   : > { %263 = vst [vmem:[%s3378_s7 + $0x40] sm:$0xff] %v262_v8  ;;  %v268_v11 = vld [vmem:[%s3373_s22 + $0x98] sm:$0xff]  ;;  %265 = vst [vmem:[%s3378_s7 + $0x48] sm:$0xff] %v264_v9  ;;  %v270_v12 = vld [vmem:[%s3373_s22 + $0xc0] sm:$0xff] }
  0x21   : > { %267 = vst [vmem:[%s3378_s7 + $0x50] sm:$0xff] %v266_v10  ;;  %269 = vst [vmem:[%s3378_s7 + $0x58] sm:$0xff] %v268_v11  ;;  %v272_v13 = vld [vmem:[%s3373_s22 + $0xc8] sm:$0xff]  ;;  %v274_v14 = vld [vmem:[%s3373_s22 + $0xd0] sm:$0xff] }
  0x22   : > { %271 = vst [vmem:[%s3378_s7 + $0x60] sm:$0xff] %v270_v12  ;;  %273 = vst [vmem:[%s3378_s7 + $0x68] sm:$0xff] %v272_v13  ;;  %v276_v15 = vld [vmem:[%s3373_s22 + $0xd8] sm:$0xff]  ;;  %v278_v16 = vld [vmem:[%s3373_s22 + $0x100] sm:$0xff] }
  0x23   : > { %275 = vst [vmem:[%s3378_s7 + $0x70] sm:$0xff] %v274_v14  ;;  %v280_v17 = vld [vmem:[%s3373_s22 + $0x108] sm:$0xff]  ;;  %277 = vst [vmem:[%s3378_s7 + $0x78] sm:$0xff] %v276_v15  ;;  %v282_v18 = vld [vmem:[%s3373_s22 + $0x110] sm:$0xff] }
  0x24   : > { %279 = vst [vmem:[%s3378_s7 + $0x80] sm:$0xff] %v278_v16  ;;  %281 = vst [vmem:[%s3378_s7 + $0x88] sm:$0xff] %v280_v17  ;;  %v284_v19 = vld [vmem:[%s3373_s22 + $0x118] sm:$0xff]  ;;  %v286_v20 = vld [vmem:[%s3373_s22 + $0x140] sm:$0xff] }
  0x25   : > { %283 = vst [vmem:[%s3378_s7 + $0x90] sm:$0xff] %v282_v18  ;;  %285 = vst [vmem:[%s3378_s7 + $0x98] sm:$0xff] %v284_v19  ;;  %v288_v21 = vld [vmem:[%s3373_s22 + $0x148] sm:$0xff]  ;;  %v290_v22 = vld [vmem:[%s3373_s22 + $0x150] sm:$0xff] }
  0x26   : > { %287 = vst [vmem:[%s3378_s7 + $0xa0] sm:$0xff] %v286_v20  ;;  %v292_v23 = vld [vmem:[%s3373_s22 + $0x158] sm:$0xff]  ;;  %289 = vst [vmem:[%s3378_s7 + $0xa8] sm:$0xff] %v288_v21  ;;  %v294_v24 = vld [vmem:[%s3373_s22 + $0x180] sm:$0xff] }
  0x27   : > { %291 = vst [vmem:[%s3378_s7 + $0xb0] sm:$0xff] %v290_v22  ;;  %293 = vst [vmem:[%s3378_s7 + $0xb8] sm:$0xff] %v292_v23  ;;  %v296_v25 = vld [vmem:[%s3373_s22 + $0x188] sm:$0xff]  ;;  %v298_v26 = vld [vmem:[%s3373_s22 + $0x190] sm:$0xff] }
  0x28   : > { %295 = vst [vmem:[%s3378_s7 + $0xc0] sm:$0xff] %v294_v24  ;;  %297 = vst [vmem:[%s3378_s7 + $0xc8] sm:$0xff] %v296_v25  ;;  %v300_v27 = vld [vmem:[%s3373_s22 + $0x198] sm:$0xff]  ;;  %v302_v28 = vld [vmem:[%s3373_s22 + $0x1c0] sm:$0xff] }
  0x29   : > { %299 = vst [vmem:[%s3378_s7 + $0xd0] sm:$0xff] %v298_v26  ;;  %v304_v29 = vld [vmem:[%s3373_s22 + $0x1c8] sm:$0xff]  ;;  %301 = vst [vmem:[%s3378_s7 + $0xd8] sm:$0xff] %v300_v27  ;;  %v306_v30 = vld [vmem:[%s3373_s22 + $0x1d0] sm:$0xff] }
  0x2a   : > { %303 = vst [vmem:[%s3378_s7 + $0xe0] sm:$0xff] %v302_v28  ;;  %305 = vst [vmem:[%s3378_s7 + $0xe8] sm:$0xff] %v304_v29  ;;  %v308_v31 = vld [vmem:[%s3373_s22 + $0x1d8] sm:$0xff] }
  0x2b   : > { %307 = vst [vmem:[%s3378_s7 + $0xf0] sm:$0xff] %v306_v30  ;;  %309 = vst [vmem:[%s3378_s7 + $0xf8] sm:$0xff] %v308_v31 }
  0x2c PF: > { %p2820_p9 = scmp.ge.s32.totalorder %s3265_s29, 1  ;;  %p322_p10 = scmp.lt.s32.totalorder %s3265_s29, 5 }
  0x2e   : > { %p323_p11 = pnand %p2820_p9, %p322_p10 }
  0x30   : > { %326 = sbr.rel (%p323_p11) target bundleno = 1835 (0x72b), region = 63 }
  0x35   : > { %s329_s8 = sand.u32 1, %s3241_s23   ;;  %p363_p12 = scmp.lt.s32.totalorder %s3253_s26, 1 }
  0x36   : > { %s2821_s10 = sshll.u32 %s329_s8, 8  ;;  %p2825_p13 = scmp.ne.s32.totalorder %s3249_s25, 0 }
  0x37   : > { %s364_s11 = scalar_select %p363_p12, %s3253_s26, 1 }
  0x38   : > { %s3451_s17 = scalar_lea.vmem [#allocation5], %s2821_s10  ;;  %s3453_s18 = scalar_lea.vmem [#allocation6], %s2821_s10 }
  0x39   : > { %s2943_s12 = sshll.u32 %s364_s11, 8  ;;  %374 = sbr.rel (%p2825_p13) target bundleno = 574 (0x23e), region = 71 }
  0x3a   : > { %s3449_s16 = scalar_lea.vmem %s4396_s1, %s2943_s12 }
  0x3e   : > { %v404_v32 = vld [vmem:[%s3449_s16 + $0xc0] sm:$0xff]  ;;  %v405_v34 = vld [vmem:[%s3449_s16 + $0xc8] sm:$0xff]  ;;  %v3267_v40 = vmov 0   ;;  %v406_v63 = vld [vmem:[%s3449_s16 + $0xd0] sm:$0xff]  ;;  %vm585_vm0 = vcmask 523264   ;;  %vm910_vm1 = vcmask 261120  }
  0x3f   : > { %v408_v33 = vld [vmem:[%s3449_s16 + $0xe0] sm:$0xff]  ;;  %v409_v36 = vld [vmem:[%s3449_s16 + $0xe8] sm:$0xff]  ;;  %627 = vmatprep.mubr.bf16.mxu0 %v3267_v40  ;;  %688 = vmatprep.mubr.bf16.mxu1 %v3267_v40  ;;  %v410_v0 = vld [vmem:[%s3449_s16 + $0xf0] sm:$0xff] }
  0x40   : > { %v2854_v35 = vcombine.high %v404_v32, %v408_v33  ;;  %v2853_v37 = vcombine.low %v404_v32, %v408_v33  ;;  %v396_v38 = vld [vmem:[%s3449_s16 + $0x80] sm:$0xff]  ;;  %v2856_v41 = vcombine.high %v405_v34, %v409_v36  ;;  %v2855_v42 = vcombine.low %v405_v34, %v409_v36  ;;  %v397_v44 = vld [vmem:[%s3449_s16 + $0x88] sm:$0xff]  ;;  %v398_v4 = vld [vmem:[%s3449_s16 + $0x90] sm:$0xff] }
  0x41   : > { %v400_v39 = vld [vmem:[%s3449_s16 + $0xa0] sm:$0xff]  ;;  %v401_v45 = vld [vmem:[%s3449_s16 + $0xa8] sm:$0xff]  ;;  %v402_v5 = vld [vmem:[%s3449_s16 + $0xb0] sm:$0xff]  ;;  %v2858_v6 = vcombine.high %v406_v63, %v410_v0  ;;  %v2857_v7 = vcombine.low %v406_v63, %v410_v0 }
  0x42   : > { %v2846_v43 = vcombine.high %v396_v38, %v400_v39  ;;  %v388_v46 = vld [vmem:[%s3449_s16 + $0x40] sm:$0xff]  ;;  %603 = vmatprep.subr.bf16.mxu0 %v2854_v35  ;;  %v2848_v47 = vcombine.high %v397_v44, %v401_v45  ;;  %v389_v49 = vld [vmem:[%s3449_s16 + $0x48] sm:$0xff]  ;;  %664 = vmatprep.subr.bf16.mxu1 %v2856_v41  ;;  %v2845_v51 = vcombine.low %v396_v38, %v400_v39  ;;  %v390_v9 = vld [vmem:[%s3449_s16 + $0x50] sm:$0xff] }
  0x43   : > { %v392_v48 = vld [vmem:[%s3449_s16 + $0x60] sm:$0xff]  ;;  %v393_v50 = vld [vmem:[%s3449_s16 + $0x68] sm:$0xff]  ;;  %604 = vmatpush1.bf16.msra.mxu0 %v2853_v37  ;;  %665 = vmatpush1.bf16.msra.mxu1 %v2855_v42  ;;  %v2847_v52 = vcombine.low %v397_v44, %v401_v45  ;;  %v2850_v8 = vcombine.high %v398_v4, %v402_v5  ;;  %v394_v10 = vld [vmem:[%s3449_s16 + $0x70] sm:$0xff]  ;;  %v2849_v11 = vcombine.low %v398_v4, %v402_v5 }
  0x44   : > { %605 = vmatprep.subr.bf16.mxu0 %v2846_v43  ;;  %v2838_v53 = vcombine.high %v388_v46, %v392_v48  ;;  %666 = vmatprep.subr.bf16.mxu1 %v2848_v47  ;;  %v2840_v54 = vcombine.high %v389_v49, %v393_v50  ;;  %v380_v55 = vld [vmem:[%s3449_s16] sm:$0xff]  ;;  %v381_v57 = vld [vmem:[%s3449_s16 + $0x8] sm:$0xff]  ;;  %v2837_v59 = vcombine.low %v388_v46, %v392_v48  ;;  %v382_v14 = vld [vmem:[%s3449_s16 + $0x10] sm:$0xff] }
  0x45   : > { %v384_v56 = vld [vmem:[%s3449_s16 + $0x20] sm:$0xff]  ;;  %v385_v58 = vld [vmem:[%s3449_s16 + $0x28] sm:$0xff]  ;;  %v2839_v60 = vcombine.low %v389_v49, %v393_v50  ;;  %v2842_v12 = vcombine.high %v390_v9, %v394_v10  ;;  %v386_v15 = vld [vmem:[%s3449_s16 + $0x30] sm:$0xff]  ;;  %v2841_v16 = vcombine.low %v390_v9, %v394_v10 }
  0x46   : > { %v2830_v61 = vcombine.high %v380_v55, %v384_v56  ;;  %v2832_v62 = vcombine.high %v381_v57, %v385_v58  ;;  %v2829_v1 = vcombine.low %v380_v55, %v384_v56  ;;  %v2831_v2 = vcombine.low %v381_v57, %v385_v58  ;;  %v3479_v3 = vld [vmem:[%s4398_s3] sm:$0xff]   ;;  %v3021_v13 = vld [vmem:[%s4398_s3 + $0x8] sm:$0xff]   ;;  %v407_v18 = vld [vmem:[%s3449_s16 + $0xd8] sm:$0xff] }
  0x47   : > { %606 = vmatpush1.bf16.msra.mxu0 %v2845_v51  ;;  %667 = vmatpush1.bf16.msra.mxu1 %v2847_v52  ;;  %v2834_v17 = vcombine.high %v382_v14, %v386_v15  ;;  %v411_v19 = vld [vmem:[%s3449_s16 + $0xf8] sm:$0xff]  ;;  %v2833_v20 = vcombine.low %v382_v14, %v386_v15  ;;  %v3022_v22 = vld [vmem:[%s4398_s3 + $0x10] ss:$0 sps:$4 sm:$0xff]  }
  0x48   : > { %607 = vmatprep.subr.bf16.mxu0 %v2838_v53  ;;  %668 = vmatprep.subr.bf16.mxu1 %v2840_v54  ;;  %v2860_v21 = vcombine.high %v407_v18, %v411_v19  ;;  %v399_v23 = vld [vmem:[%s3449_s16 + $0x98] sm:$0xff]  ;;  %v2859_v25 = vcombine.low %v407_v18, %v411_v19 }
  0x49   : > { %v403_v24 = vld [vmem:[%s3449_s16 + $0xb8] sm:$0xff] }
  0x4a   : > { %v2852_v26 = vcombine.high %v399_v23, %v403_v24  ;;  %v391_v27 = vld [vmem:[%s3449_s16 + $0x58] sm:$0xff]  ;;  %v2851_v29 = vcombine.low %v399_v23, %v403_v24 }
  0x4b   : > { %608 = vmatpush1.bf16.msra.mxu0 %v2837_v59  ;;  %669 = vmatpush1.bf16.msra.mxu1 %v2839_v60  ;;  %v395_v28 = vld [vmem:[%s3449_s16 + $0x78] sm:$0xff] }
  0x4c   : > { %609 = vmatprep.subr.bf16.mxu0 %v2830_v61  ;;  %670 = vmatprep.subr.bf16.mxu1 %v2832_v62  ;;  %v2844_v30 = vcombine.high %v391_v27, %v395_v28  ;;  %v383_v31 = vld [vmem:[%s3449_s16 + $0x18] sm:$0xff]  ;;  %v2843_v33 = vcombine.low %v391_v27, %v395_v28 }
  0x4d   : > { %v387_v32 = vld [vmem:[%s3449_s16 + $0x38] sm:$0xff] }
  0x4e   : > { %v2836_v34 = vcombine.high %v383_v31, %v387_v32  ;;  %v2835_v35 = vcombine.low %v383_v31, %v387_v32 }
  0x4f   : > { %610 = vmatpush1.bf16.msra.mxu0 %v2829_v1  ;;  %671 = vmatpush1.bf16.msra.mxu1 %v2831_v2 }
  0x50   : > { %725 = vmatprep.subr.bf16.mxu0 %v2858_v6  ;;  %2953 = vmatprep.subr.bf16.mxu1 %v2858_v6 }
  0x52   : > { %2861 = vmatmul.mubr.msk.bf16.vlgmr.msra.gmra.mxu0 %vm585_vm0, %v3479_v3  ;;  %2864 = vmatmul.mubr.msk.bf16.vlgmr.msra.gmra.mxu1 %vm585_vm0, %v3479_v3 }
  0x53   : > { %637 = vmatprep.mubr.bf16.mxu0 %v3267_v40  ;;  %2957 = vmatpush1.bf16.msra.mxu1 %v2857_v7 }
  0x54   : > { %698 = vmatprep.mubr.bf16.mxu1 %v3267_v40  ;;  %2954 = vmatprep.subr.bf16.mxu1 %v2850_v8 }
  0x55   : > { %726 = vmatpush1.bf16.msra.mxu0 %v2857_v7 }
  0x56   : > { %727 = vmatprep.subr.bf16.mxu0 %v2850_v8 }
  0x57   : > { %2958 = vmatpush1.bf16.msra.mxu1 %v2849_v11 }
  0x58   : > { %2955 = vmatprep.subr.bf16.mxu1 %v2842_v12 }
  0x59   : > { %728 = vmatpush1.bf16.msra.mxu0 %v2849_v11 }
  0x5a   : > { %2862 = vmatmul.mubr.msk.bf16.gmra.mxu0 %vm585_vm0, %v3021_v13  ;;  %729 = vmatprep.subr.bf16.mxu0 %v2842_v12 }
  0x5b   : > { %2865 = vmatmul.mubr.msk.bf16.gmra.mxu1 %vm585_vm0, %v3021_v13  ;;  %647 = vmatprep.mubr.bf16.mxu0 %v3267_v40 }
  0x5c   : > { %2959 = vmatpush1.bf16.msra.mxu1 %v2841_v16  ;;  %708 = vmatprep.mubr.bf16.mxu1 %v3267_v40 }
  0x5d   : > { %2956 = vmatprep.subr.bf16.mxu1 %v2834_v17  ;;  %730 = vmatpush1.bf16.msra.mxu0 %v2841_v16 }
  0x5e   : > { %731 = vmatprep.subr.bf16.mxu0 %v2834_v17 }
  0x60   : > { %2960 = vmatpush1.bf16.msra.mxu1 %v2833_v20 }
  0x61   : > { %786 = vmatprep.subr.bf16.mxu1 %v2860_v21  ;;  %732 = vmatpush1.bf16.msra.mxu0 %v2833_v20 }
  0x62   : > { %2863 = vmatmul.mubr.msk.bf16.gmra.mxu0 %vm585_vm0, %v3022_v22 }
  0x63   : > { %2866 = vmatmul.mubr.msk.bf16.gmra.mxu1 %vm585_vm0, %v3022_v22  ;;  %749 = vmatprep.mubr.bf16.mxu0 %v3267_v40 }
  0x64   : > { %759 = vmatprep.mubr.bf16.mxu1 %v3267_v40 }
  0x6a   : > { %2867 = vmatmul.mubr.msk.bf16.vlgmr.msra.gmra.mxu0 %vm585_vm0, %v3479_v3 }
  0x6b   : > { %2868 = vmatmul.mubr.msk.bf16.vlgmr.msra.gmra.mxu1 %vm585_vm0, %v3021_v13  ;;  %955 = vmatprep.mubr.bf16.mxu0 %v3267_v40 }
  0x6c   : > { %787 = vmatpush1.bf16.msra.mxu1 %v2859_v25  ;;  %769 = vmatprep.mubr.bf16.mxu1 %v3267_v40 }
  0x6d   : > { %788 = vmatprep.subr.bf16.mxu1 %v2852_v26 }
  0x70   : > { %789 = vmatpush1.bf16.msra.mxu1 %v2851_v29 }
  0x71   : > { %790 = vmatprep.subr.bf16.mxu1 %v2844_v30 }
  0x73   : > { %2869 = vmatmul.mubr.msk.bf16.gmra.mxu1 %vm585_vm0, %v3022_v22 }
  0x74   : > { %791 = vmatpush1.bf16.msra.mxu1 %v2843_v33  ;;  %810 = vmatprep.mubr.bf16.mxu1 %v3267_v40 }
  0x75   : > { %792 = vmatprep.subr.bf16.mxu1 %v2836_v34 }
  0x78   : > { %793 = vmatpush1.bf16.msra.mxu1 %v2835_v35 }
  0x7b   : > { %2870 = vmatmul.mubr.msk.bf16.vlgmr.msra.gmra.mxu1 %vm585_vm0, %v3479_v3 }
  0x7c   : > { %820 = vmatprep.mubr.bf16.mxu1 %v3267_v40 }
  0x83   : > { %2871 = vmatmul.mubr.msk.bf16.gmra.mxu1 %vm585_vm0, %v3021_v13 }
  0x84   : > { %830 = vmatprep.mubr.bf16.mxu1 %v3267_v40 }
  0x8b   : > { %2872 = vmatmul.mubr.msk.bf16.gmra.mxu1 %vm585_vm0, %v3022_v22 }
 0x112   : > { %v629_v36 = vpop.f32.mrf.mxu0  ;;  %v690_v37 = vpop.f32.mrf.mxu1 }
 0x113   : > { %v839_v10 = vmax.f32 %v629_v36, %v690_v37 }
 0x114   : > { %v631_v38 = vpop.f32.mrf.mxu0  ;;  %v692_v39 = vpop.f32.mrf.mxu1 }
 0x115   : > { %v840_v11 = vmax.f32 %v631_v38, %v692_v39 }
 0x116   : > { %v3528_v41 = vpop.f32.mrf.mxu0  ;;  %v3530_v42 = vpop.f32.mrf.mxu1 }
 0x118   : > { %v3532_v43 = vpop.f32.mrf.mxu0  ;;  %v3534_v44 = vpop.f32.mrf.mxu1 }
 0x11a   : > { %v3536_v45 = vpop.f32.mrf.mxu0 }
 0x11b   : > { %v3538_v46 = vpop.f32.mrf.mxu1 }
 0x11c   : > { %v641_v47 = vpop.f32.mrf.mxu0 }
 0x11d   : > { %v702_v48 = vpop.f32.mrf.mxu1 }
 0x11e   : > { %v3540_v49 = vpop.f32.mrf.mxu0  ;;  %v844_v28 = vmax.f32 %v641_v47, %v702_v48  ;;  %v843_v47 = vmax.f32 %v3536_v45, %v3538_v46  ;;  %v3026_v45 = vld [vmem:[%s4399_s4 + $0x18] sm:$0xff]   ;;  %v3268_v46 = vmov 1065369472  }
 0x11f   : > { %v704_v50 = vpop.f32.mrf.mxu1  ;;  %1052 = vst [vmem:[#allocation3 + $0x8] sm:$0xff] %v3268_v46 }
 0x120   : > { %v645_v51 = vpop.f32.mrf.mxu0  ;;  %v845_v36 = vmax.f32 %v3540_v49, %v704_v50  ;;  %v841_v49 = vmax.f32 %v3528_v41, %v3530_v42  ;;  %v3024_v41 = vld [vmem:[%s4399_s4 + $0x8] sm:$0xff]   ;;  %v3025_v42 = vld [vmem:[%s4399_s4 + $0x10] sm:$0xff]  }
 0x121   : > { %v706_v52 = vpop.f32.mrf.mxu1 }
 0x122   : > { %v649_v53 = vpop.f32.mrf.mxu0  ;;  %v846_v32 = vmax.f32 %v645_v51, %v706_v52 }
 0x123   : > { %v710_v54 = vpop.f32.mrf.mxu1 }
 0x124   : > { %v651_v55 = vpop.f32.mrf.mxu0  ;;  %v847_v29 = vmax.f32 %v649_v53, %v710_v54 }
 0x125   : > { %v712_v56 = vpop.f32.mrf.mxu1 }
 0x126   : > { %v653_v57 = vpop.f32.mrf.mxu0  ;;  %v848_v33 = vmax.f32 %v651_v55, %v712_v56 }
 0x127   : > { %v714_v58 = vpop.f32.mrf.mxu1  ;;  %v842_v57 = vmax.f32 %v3532_v43, %v3534_v44  ;;  %v3023_v44 = vld [vmem:[%s4399_s4] sm:$0xff]  }
 0x128   : > { %v654_v59 = vpop.f32.mrf.mxu0 }
 0x129   : > { %v715_v60 = vpop.f32.mrf.mxu1 }
 0x12a   : > { %v751_v4 = vpop.f32.mrf.mxu0 }
 0x12b   : > { %v761_v61 = vpop.f32.mrf.mxu1 }
 0x12c   : > { %v753_v7 = vpop.f32.mrf.mxu0 }
 0x12d   : > { %v763_v62 = vpop.f32.mrf.mxu1 }
 0x12e   : > { %v755_v20 = vpop.f32.mrf.mxu0 }
 0x12f   : > { %v765_v63 = vpop.f32.mrf.mxu1 }
 0x130   : > { %v757_v23 = vpop.f32.mrf.mxu0 }
 0x131   : > { %v767_v0 = vpop.f32.mrf.mxu1 }
 0x133   : > { %v771_v1 = vpop.f32.mrf.mxu1 }
 0x135   : > { %v773_v2 = vpop.f32.mrf.mxu1 }
 0x137   : > { %v775_v3 = vpop.f32.mrf.mxu1 }
 0x139   : > { %v776_v5 = vpop.f32.mrf.mxu1 }
 0x13b   : > { %v812_v6 = vpop.f32.mrf.mxu1 }
 0x13c   : > { %v849_v8 = vmax.f32 %v751_v4, %v812_v6 }
 0x13d   : > { %v814_v9 = vpop.f32.mrf.mxu1 }
 0x13e   : > { %v850_v12 = vmax.f32 %v753_v7, %v814_v9  ;;  %v859_v14 = vmax.f32 %v839_v10, %v849_v8 }
 0x13f   : > { %v816_v13 = vpop.f32.mrf.mxu1 }
 0x140   : > { %v860_v15 = vmax.f32 %v840_v11, %v850_v12  ;;  %v851_v48 = vmax.f32 %v755_v20, %v816_v13 }
 0x141   : > { %v818_v16 = vpop.f32.mrf.mxu1 }
 0x142   : > { %v2944_v17 = vpack.c.bf16 %v860_v15, %v859_v14  ;;  %v852_v34 = vmax.f32 %v757_v23, %v818_v16 }
 0x143   : > { %v822_v18 = vpop.f32.mrf.mxu1 }
 0x144   : > { %877 = vst [vmem:[#allocation2] sm:$0xff] %v2944_v17  ;;  %v853_v37 = vmax.f32 %v761_v61, %v822_v18  ;;  %v862_v52 = vmax.f32 %v842_v57, %v852_v34  ;;  %v861_v61 = vmax.f32 %v841_v49, %v851_v48 }
 0x145   : > { %v824_v19 = vpop.f32.mrf.mxu1 }
 0x146   : > { %v854_v25 = vmax.f32 %v763_v62, %v824_v19  ;;  %v863_v50 = vmax.f32 %v843_v47, %v853_v37 }
 0x147   : > { %v826_v21 = vpop.f32.mrf.mxu1 }
 0x148   : > { %v855_v30 = vmax.f32 %v765_v63, %v826_v21  ;;  %v864_v58 = vmax.f32 %v844_v28, %v854_v25  ;;  %v886_v43 = vpack.c.bf16 %v863_v50, %v861_v61 }
 0x149   : > { %v828_v22 = vpop.f32.mrf.mxu1 }
 0x14a   : > { %v856_v26 = vmax.f32 %v767_v0, %v828_v22  ;;  %v865_v53 = vmax.f32 %v845_v36, %v855_v30  ;;  %v887_v56 = vpack.c.bf16 %v864_v58, %v862_v52 }
 0x14b   : > { %v832_v24 = vpop.f32.mrf.mxu1 }
 0x14c   : > { %v857_v27 = vmax.f32 %v771_v1, %v832_v24  ;;  %v866_v59 = vmax.f32 %v846_v32, %v856_v26 }
 0x14d   : > { %v834_v31 = vpop.f32.mrf.mxu1 }
 0x14e   : > { %v858_v35 = vmax.f32 %v773_v2, %v834_v31  ;;  %v867_v38 = vmax.f32 %v847_v29, %v857_v27 }
 0x14f   : > { %v836_v39 = vpop.f32.mrf.mxu1 }
 0x150   : > { %v868_v60 = vmax.f32 %v848_v33, %v858_v35  ;;  %v888_v55 = vpack.c.bf16 %v867_v38, %v865_v53 }
 0x151   : > { %v837_v51 = vpop.f32.mrf.mxu1 }
 0x152   : > { %v889_v54 = vpack.c.bf16 %v868_v60, %v866_v59 }
 0x154   : > { %935 = vmatprep.subr.bf16.mxu0 %v889_v54 }
 0x155   : > { %936 = vmatpush1.bf16.msra.mxu0 %v888_v55 }
 0x156   : > { %937 = vmatprep.subr.bf16.mxu0 %v887_v56 }
 0x159   : > { %938 = vmatpush1.bf16.msra.mxu0 %v886_v43 }
 0x15c   : > { %2878 = vmatmul.mubr.msk.bf16.vlgmr.msra.gmra.mxu0 %vm910_vm1, %v3023_v44 }
 0x15d   : > { %965 = vmatprep.mubr.bf16.mxu0 %v3267_v40 }
 0x164   : > { %2879 = vmatmul.mubr.msk.bf16.gmra.mxu0 %vm910_vm1, %v3024_v41 }
 0x165   : > { %975 = vmatprep.mubr.bf16.mxu0 %v3267_v40 }
 0x16c   : > { %2880 = vmatmul.mubr.msk.bf16.gmra.mxu0 %vm910_vm1, %v3025_v42 }
 0x16d   : > { %985 = vmatprep.mubr.bf16.mxu0 %v3267_v40 }
 0x174   : > { %2881 = vmatmul.mubr.msk.bf16.gmra.mxu0 %vm910_vm1, %v3026_v45 }
 0x21c   : > { %v957_v62 = vpop.f32.mrf.mxu0 }
 0x21e   : > { %v959_v63 = vpop.f32.mrf.mxu0 }
 0x21f   : > { %v2945_v0 = vpack.c.bf16 %v959_v63, %v957_v62 }
 0x220   : > { %v961_v1 = vpop.f32.mrf.mxu0 }
 0x221   : > { %1044 = vst [vmem:[#allocation3 + $0x30] sm:$0xff] %v2945_v0 }
 0x222   : > { %v963_v2 = vpop.f32.mrf.mxu0 }
 0x223   : > { %v2946_v3 = vpack.c.bf16 %v963_v2, %v961_v1 }
 0x224   : > { %v967_v4 = vpop.f32.mrf.mxu0 }
 0x225   : > { %1045 = vst [vmem:[#allocation3] sm:$0xff] %v2946_v3 }
 0x226   : > { %v969_v5 = vpop.f32.mrf.mxu0 }
 0x227   : > { %v2947_v6 = vpack.c.bf16 %v969_v5, %v967_v4 }
 0x228   : > { %v971_v7 = vpop.f32.mrf.mxu0 }
 0x229   : > { %1046 = vst [vmem:[#allocation3 + $0x18] sm:$0xff] %v2947_v6 }
 0x22a   : > { %v973_v40 = vpop.f32.mrf.mxu0 }
 0x22b   : > { %v2948_v8 = vpack.c.bf16 %v973_v40, %v971_v7 }
 0x22c   : > { %v977_v9 = vpop.f32.mrf.mxu0 }
 0x22d   : > { %1047 = vst [vmem:[#allocation3 + $0x10] sm:$0xff] %v2948_v8 }
 0x22e   : > { %v979_v10 = vpop.f32.mrf.mxu0 }
 0x22f   : > { %v2949_v11 = vpack.c.bf16 %v979_v10, %v977_v9 }
 0x230   : > { %v981_v12 = vpop.f32.mrf.mxu0 }
 0x231   : > { %1048 = vst [vmem:[#allocation3 + $0x20] sm:$0xff] %v2949_v11 }
 0x232   : > { %v983_v13 = vpop.f32.mrf.mxu0 }
 0x233   : > { %v2950_v14 = vpack.c.bf16 %v983_v13, %v981_v12 }
 0x234   : > { %v987_v15 = vpop.f32.mrf.mxu0 }
 0x235   : > { %1049 = vst [vmem:[#allocation3 + $0x28] sm:$0xff] %v2950_v14 }
 0x236   : > { %v989_v16 = vpop.f32.mrf.mxu0 }
 0x237   : > { %v2951_v17 = vpack.c.bf16 %v989_v16, %v987_v15 }
 0x238   : > { %v991_v18 = vpop.f32.mrf.mxu0 }
 0x239   : > { %1050 = vst [vmem:[#allocation3 + $0x40] sm:$0xff] %v2951_v17 }
 0x23a   : > { %v993_v19 = vpop.f32.mrf.mxu0 }
 0x23b   : > { %v2952_v20 = vpack.c.bf16 %v993_v19, %v991_v18 }
 0x23d   : > { %1051 = vst [vmem:[#allocation3 + $0x38] sm:$0xff] %v2952_v20 }
 0x23e PF: > { %v1078_v21 = vld [vmem:[%s3451_s17 + $0xc8] sm:$0xff]  ;;  %v1077_v23 = vld [vmem:[%s3451_s17 + $0xc0] sm:$0xff]  ;;  %v3269_v28 = vmov 0   ;;  %v1080_v48 = vld [vmem:[%s3451_s17 + $0xd8] sm:$0xff]  ;;  %vm1102_vm2 = vcmask 523264   ;;  %vm1359_vm3 = vcmask 1043456  }
 0x23f   : > { %v1082_v22 = vld [vmem:[%s3451_s17 + $0xe8] sm:$0xff]  ;;  %v1081_v25 = vld [vmem:[%s3451_s17 + $0xe0] sm:$0xff]  ;;  %1138 = vmatprep.mubr.bf16.mxu0 %v3269_v28  ;;  %v1084_v53 = vld [vmem:[%s3451_s17 + $0xf8] sm:$0xff]  ;;  %vm1262_vm4 = vcmask 64512   ;;  %s2517_s21 = sld [smem:[#allocation4]]  ;;  %s2939_s22 = sshll.u32 (%p3356_p6), %s3253_s26, 6 }
 0x240   : > { %v1099_v24 = vpack.c.bf16 %v1082_v22, %v1078_v21  ;;  %v1070_v26 = vld [vmem:[%s3451_s17 + $0x88] sm:$0xff]  ;;  %v1098_v29 = vpack.c.bf16 %v1081_v25, %v1077_v23  ;;  %v1069_v31 = vld [vmem:[%s3451_s17 + $0x80] sm:$0xff]  ;;  %v1079_v51 = vld [vmem:[%s3451_s17 + $0xd0] sm:$0xff]  ;;  %v1101_v54 = vpack.c.bf16 %v1084_v53, %v1080_v48 }
 0x241   : > { %v1074_v27 = vld [vmem:[%s3451_s17 + $0xa8] sm:$0xff]  ;;  %v1073_v32 = vld [vmem:[%s3451_s17 + $0xa0] sm:$0xff]  ;;  %v1083_v49 = vld [vmem:[%s3451_s17 + $0xf0] sm:$0xff] }
 0x242   : > { %v1095_v30 = vpack.c.bf16 %v1074_v27, %v1070_v26  ;;  %v1062_v33 = vld [vmem:[%s3451_s17 + $0x48] sm:$0xff]  ;;  %1114 = vmatprep.subr.bf16.mxu0 %v1099_v24  ;;  %v1094_v35 = vpack.c.bf16 %v1073_v32, %v1069_v31  ;;  %v1061_v37 = vld [vmem:[%s3451_s17 + $0x40] sm:$0xff]  ;;  %v1072_v50 = vld [vmem:[%s3451_s17 + $0x98] sm:$0xff]  ;;  %v1100_v61 = vpack.c.bf16 %v1083_v49, %v1079_v51 }
 0x243   : > { %v1066_v34 = vld [vmem:[%s3451_s17 + $0x68] sm:$0xff]  ;;  %1115 = vmatpush1.bf16.msra.mxu0 %v1098_v29  ;;  %v1065_v38 = vld [vmem:[%s3451_s17 + $0x60] sm:$0xff]  ;;  %v1076_v55 = vld [vmem:[%s3451_s17 + $0xb8] sm:$0xff] }
 0x244   : > { %1116 = vmatprep.subr.bf16.mxu0 %v1095_v30  ;;  %v1091_v36 = vpack.c.bf16 %v1066_v34, %v1062_v33  ;;  %v1054_v39 = vld [vmem:[%s3451_s17 + $0x8] sm:$0xff]  ;;  %v1090_v58 = vpack.c.bf16 %v1065_v38, %v1061_v37  ;;  %v1053_v60 = vld [vmem:[%s3451_s17] sm:$0xff]  ;;  %v1085_v56 = vld [vmem:[%s4397_s2] sm:$0xf]  ;;  %v1097_v43 = vpack.c.bf16 %v1076_v55, %v1072_v50 }
 0x245   : > { %v1058_v57 = vld [vmem:[%s3451_s17 + $0x28] sm:$0xff]  ;;  %v1057_v47 = vld [vmem:[%s3451_s17 + $0x20] sm:$0xff]  ;;  %v1071_v44 = vld [vmem:[%s3451_s17 + $0x90] sm:$0xff] }
 0x246   : > { %v1087_v59 = vpack.c.bf16 %v1058_v57, %v1054_v39  ;;  %v1086_v52 = vpack.c.bf16 %v1057_v47, %v1053_v60  ;;  %v1075_v41 = vld [vmem:[%s3451_s17 + $0xb0] sm:$0xff]  ;;  %v1064_v42 = vld [vmem:[%s3451_s17 + $0x58] sm:$0xff] }
 0x247   : > { %1117 = vmatpush1.bf16.msra.mxu0 %v1094_v35  ;;  %v1068_v45 = vld [vmem:[%s3451_s17 + $0x78] sm:$0xff]  ;;  %v1096_v46 = vpack.c.bf16 %v1075_v41, %v1071_v44  ;;  %v1063_v63 = vld [vmem:[%s3451_s17 + $0x50] sm:$0xff] }
 0x248   : > { %1118 = vmatprep.subr.bf16.mxu0 %v1091_v36  ;;  %v1093_v62 = vpack.c.bf16 %v1068_v45, %v1064_v42  ;;  %v1067_v0 = vld [vmem:[%s3451_s17 + $0x70] sm:$0xff]  ;;  %v1056_v1 = vld [vmem:[%s3451_s17 + $0x18] sm:$0xff] }
 0x249   : > { %v1060_v2 = vld [vmem:[%s3451_s17 + $0x38] sm:$0xff]  ;;  %v1092_v3 = vpack.c.bf16 %v1067_v0, %v1063_v63  ;;  %v1055_v5 = vld [vmem:[%s3451_s17 + $0x10] sm:$0xff] }
 0x24a   : > { %v1089_v4 = vpack.c.bf16 %v1060_v2, %v1056_v1  ;;  %v1059_v6 = vld [vmem:[%s3451_s17 + $0x30] sm:$0xff] }
 0x24b   : > { %1119 = vmatpush1.bf16.msra.mxu0 %v1090_v58  ;;  %v1088_v7 = vpack.c.bf16 %v1059_v6, %v1055_v5  ;;  %v1192_v40 = vld [vmem:[#allocation2] sm:$0xff] }
 0x24c   : > { %1120 = vmatprep.subr.bf16.mxu0 %v1087_v59  ;;  %v2893_v8 = vcombine.high %v1192_v40, %v1192_v40  ;;  %v2892_v9 = vcombine.low %v1192_v40, %v1192_v40 }
 0x24e   : > { %v1361_v10 = vsel %vm1359_vm3, %v2892_v9, 0 }
 0x24f   : > { %1121 = vmatpush1.bf16.msra.mxu0 %v1086_v52 }
 0x250   : > { %1155 = vmatprep.subr.bf16.mxu0 %v1101_v54 }
 0x252   : > { %2890 = vmatmul.mubr.msk.bf16.vlgmr.msra.gmra.mxu0 %vm1102_vm2, %v1085_v56 }
 0x253   : > { %1156 = vmatpush1.bf16.msra.mxu0 %v1100_v61  ;;  %1179 = vmatprep.mubr.bf16.mxu0 %v3269_v28 }
 0x254   : > { %1157 = vmatprep.subr.bf16.mxu0 %v1097_v43 }
 0x257   : > { %1158 = vmatpush1.bf16.msra.mxu0 %v1096_v46 }
 0x258   : > { %1159 = vmatprep.subr.bf16.mxu0 %v1093_v62 }
 0x25b   : > { %1160 = vmatpush1.bf16.msra.mxu0 %v1092_v3 }
 0x25c   : > { %1161 = vmatprep.subr.bf16.mxu0 %v1089_v4 }
 0x25f   : > { %1162 = vmatpush1.bf16.msra.mxu0 %v1088_v7 }
 0x260   : > { %2894 = vmatprep.subr.msk.bf16.mxu0 %vm1359_vm3, %v2893_v8 }
 0x262   : > { %2891 = vmatmul.mubr.msk.bf16.vlgmr.msra.gmra.mxu0 %vm1102_vm2, %v1085_v56 }
 0x263   : > { %1398 = vmatprep.mubr.bf16.mxu0 %v3269_v28  ;;  %1381 = vmatpush1.bf16.msra.mxu0 %v1361_v10 }
 0x312   : > { %v1140_v11 = vpop.f32.mrf.mxu0 }
 0x313   : > { %v1188_v12 = vpack.c.bf16 %v1140_v11, %v1140_v11 }
 0x314   : > { %v1142_v13 = vpop.f32.mrf.mxu0 }
 0x315   : > { %1193 = vxpose.xlu0.c.b16.start.end [1/1] (short) %v1188_v12, 128  ;;  %v1189_v21 = vpack.c.bf16 %v1142_v13, %v1142_v13 }
 0x316   : > { %v1144_v14 = vpop.f32.mrf.mxu0 }
 0x318   : > { %v1145_v15 = vpop.f32.mrf.mxu0 }
 0x322   : > { %v1181_v16 = vpop.f32.mrf.mxu0 }
 0x323   : > { %v1190_v17 = vpack.c.bf16 %v1181_v16, %v1181_v16 }
 0x324   : > { %v1183_v18 = vpop.f32.mrf.mxu0 }
 0x325   : > { %1225 = vxpose.xlu1.c.b16.start.end [1/1] (short) %v1190_v17, 128  ;;  %v1191_v22 = vpack.c.bf16 %v1183_v18, %v1183_v18 }
 0x326   : > { %v1185_v19 = vpop.f32.mrf.mxu0 }
 0x328   : > { %v1186_v20 = vpop.f32.mrf.mxu0 }
 0x332   : > { %1209 = vxpose.xlu0.c.b16.start.end [1/1] (short) %v1189_v21, 128 }
 0x342   : > { %1241 = vxpose.xlu1.c.b16.start.end [1/1] (short) %v1191_v22, 128 }
 0x377   : > { %v1201_v23 = vpop.trf.xlu0 }
 0x378   : > { %2895 = vmatmul.mubr.msk.bf16.vlgmr.msra.gmra.mxu0 %vm1262_vm4, %v1201_v23 }
 0x379   : > { %1408 = vmatprep.mubr.bf16.mxu0 %v3269_v28 }
 0x37b   : > { %v1202_v24 = vpop.trf.xlu0 }
 0x37f   : > { %v1203_v25 = vpop.trf.xlu0 }
 0x380   : > { %2896 = vmatmul.mubr.msk.bf16.gmra.mxu0 %vm1262_vm4, %v1202_v24 }
 0x381   : > { %1418 = vmatprep.mubr.bf16.mxu0 %v3269_v28 }
 0x383   : > { %v1204_v26 = vpop.trf.xlu0 }
 0x387   : > { %v1205_v27 = vpop.trf.xlu0  ;;  %v1233_v57 = vpop.trf.xlu1 }
 0x388   : > { %2897 = vmatmul.mubr.msk.bf16.gmra.mxu0 %vm1262_vm4, %v1203_v25 }
 0x389   : > { %1428 = vmatprep.mubr.bf16.mxu0 %v3269_v28 }
 0x38b   : > { %v1206_v29 = vpop.trf.xlu0  ;;  %v1234_v58 = vpop.trf.xlu1 }
 0x38f   : > { %v1207_v30 = vpop.trf.xlu0  ;;  %v1235_v59 = vpop.trf.xlu1 }
 0x390   : > { %2898 = vmatmul.mubr.msk.bf16.gmra.mxu0 %vm1262_vm4, %v1204_v26 }
 0x391   : > { %1438 = vmatprep.mubr.bf16.mxu0 %v3269_v28 }
 0x393   : > { %v1208_v31 = vpop.trf.xlu0  ;;  %v1236_v60 = vpop.trf.xlu1 }
 0x397   : > { %v1217_v32 = vpop.trf.xlu0  ;;  %v1237_v47 = vpop.trf.xlu1 }
 0x398   : > { %2899 = vmatmul.mubr.msk.bf16.gmra.mxu0 %vm1262_vm4, %v1205_v27 }
 0x399   : > { %1448 = vmatprep.mubr.bf16.mxu0 %v3269_v28 }
 0x39b   : > { %v1218_v33 = vpop.trf.xlu0  ;;  %v1238_v48 = vpop.trf.xlu1 }
 0x39f   : > { %v1219_v34 = vpop.trf.xlu0  ;;  %v1239_v53 = vpop.trf.xlu1 }
 0x3a0   : > { %2900 = vmatmul.mubr.msk.bf16.gmra.mxu0 %vm1262_vm4, %v1206_v29 }
 0x3a1   : > { %1458 = vmatprep.mubr.bf16.mxu0 %v3269_v28 }
 0x3a3   : > { %v1220_v35 = vpop.trf.xlu0  ;;  %v1240_v51 = vpop.trf.xlu1 }
 0x3a7   : > { %v1221_v36 = vpop.trf.xlu0  ;;  %v1249_v52 = vpop.trf.xlu1 }
 0x3a8   : > { %2901 = vmatmul.mubr.msk.bf16.gmra.mxu0 %vm1262_vm4, %v1207_v30 }
 0x3a9   : > { %1468 = vmatprep.mubr.bf16.mxu0 %v3269_v28 }
 0x3ab   : > { %v1222_v37 = vpop.trf.xlu0  ;;  %v1250_v55 = vpop.trf.xlu1 }
 0x3af   : > { %v1223_v38 = vpop.trf.xlu0  ;;  %v1251_v41 = vpop.trf.xlu1 }
 0x3b0   : > { %2902 = vmatmul.mubr.msk.bf16.gmra.mxu0 %vm1262_vm4, %v1208_v31 }
 0x3b1   : > { %1478 = vmatprep.mubr.bf16.mxu0 %v3269_v28 }
 0x3b3   : > { %v1224_v39 = vpop.trf.xlu0  ;;  %v1252_v63 = vpop.trf.xlu1 }
 0x3b7   : > { %v1253_v4 = vpop.trf.xlu1 }
 0x3b8   : > { %2903 = vmatmul.mubr.msk.bf16.gmra.mxu0 %vm1262_vm4, %v1217_v32 }
 0x3b9   : > { %1488 = vmatprep.mubr.bf16.mxu0 %v3269_v28 }
 0x3bb   : > { %v1254_v8 = vpop.trf.xlu1 }
 0x3bf   : > { %v1255_v13 = vpop.trf.xlu1 }
 0x3c0   : > { %2904 = vmatmul.mubr.msk.bf16.gmra.mxu0 %vm1262_vm4, %v1218_v33 }
 0x3c1   : > { %1498 = vmatprep.mubr.bf16.mxu0 %v3269_v28 }
 0x3c3   : > { %v1256_v18 = vpop.trf.xlu1 }
 0x3c8   : > { %2905 = vmatmul.mubr.msk.bf16.gmra.mxu0 %vm1262_vm4, %v1219_v34 }
 0x3c9   : > { %1508 = vmatprep.mubr.bf16.mxu0 %v3269_v28 }
 0x3d0   : > { %2906 = vmatmul.mubr.msk.bf16.gmra.mxu0 %vm1262_vm4, %v1220_v35 }
 0x3d1   : > { %1518 = vmatprep.mubr.bf16.mxu0 %v3269_v28 }
 0x3d8   : > { %2907 = vmatmul.mubr.msk.bf16.gmra.mxu0 %vm1262_vm4, %v1221_v36 }
 0x3d9   : > { %1528 = vmatprep.mubr.bf16.mxu0 %v3269_v28 }
 0x3e0   : > { %2908 = vmatmul.mubr.msk.bf16.gmra.mxu0 %vm1262_vm4, %v1222_v37 }
 0x3e1   : > { %1538 = vmatprep.mubr.bf16.mxu0 %v3269_v28 }
 0x3e8   : > { %2909 = vmatmul.mubr.msk.bf16.gmra.mxu0 %vm1262_vm4, %v1223_v38 }
 0x3e9   : > { %1548 = vmatprep.mubr.bf16.mxu0 %v3269_v28 }
 0x3f0   : > { %2910 = vmatmul.mubr.msk.bf16.gmra.mxu0 %vm1262_vm4, %v1224_v39 }
 0x3f1   : > { %1558 = vmatprep.mubr.bf16.mxu0 %v3269_v28 }
 0x3f8   : > { %2911 = vmatmul.mubr.msk.bf16.gmra.mxu0 %vm1262_vm4, %v1233_v57 }
 0x3f9   : > { %1568 = vmatprep.mubr.bf16.mxu0 %v3269_v28 }
 0x400   : > { %2912 = vmatmul.mubr.msk.bf16.gmra.mxu0 %vm1262_vm4, %v1234_v58 }
 0x401   : > { %1578 = vmatprep.mubr.bf16.mxu0 %v3269_v28 }
 0x408   : > { %2913 = vmatmul.mubr.msk.bf16.gmra.mxu0 %vm1262_vm4, %v1235_v59 }
 0x409   : > { %1588 = vmatprep.mubr.bf16.mxu0 %v3269_v28 }
 0x410   : > { %2914 = vmatmul.mubr.msk.bf16.gmra.mxu0 %vm1262_vm4, %v1236_v60 }
 0x411   : > { %1598 = vmatprep.mubr.bf16.mxu0 %v3269_v28 }
 0x418   : > { %2915 = vmatmul.mubr.msk.bf16.gmra.mxu0 %vm1262_vm4, %v1237_v47 }
 0x419   : > { %1608 = vmatprep.mubr.bf16.mxu0 %v3269_v28 }
 0x420   : > { %2916 = vmatmul.mubr.msk.bf16.gmra.mxu0 %vm1262_vm4, %v1238_v48 }
 0x421   : > { %1618 = vmatprep.mubr.bf16.mxu0 %v3269_v28 }
 0x428   : > { %2917 = vmatmul.mubr.msk.bf16.gmra.mxu0 %vm1262_vm4, %v1239_v53 }
 0x429   : > { %1628 = vmatprep.mubr.bf16.mxu0 %v3269_v28 }
 0x430   : > { %2918 = vmatmul.mubr.msk.bf16.gmra.mxu0 %vm1262_vm4, %v1240_v51 }
 0x431   : > { %1638 = vmatprep.mubr.bf16.mxu0 %v3269_v28 }
 0x438   : > { %v3652_v54 = vpop.f32.mrf.mxu0  ;;  %2919 = vmatmul.mubr.msk.bf16.gmra.mxu0 %vm1262_vm4, %v1249_v52 }
 0x439   : > { %4467 = vst [vmem:[#allocation7_spill] sm:$0xff] %v3652_v54  ;;  %1648 = vmatprep.mubr.bf16.mxu0 %v3269_v28 }
 0x43a   : > { %v3656_v49 = vpop.f32.mrf.mxu0 }
 0x43b   : > { %4468 = vst [vmem:[#allocation8_spill] sm:$0xff] %v3656_v49 }
 0x43c   : > { %v3658_v50 = vpop.f32.mrf.mxu0 }
 0x43d   : > { %4469 = vst [vmem:[#allocation9_spill] sm:$0xff] %v3658_v50 }
 0x43e   : > { %v3660_v56 = vpop.f32.mrf.mxu0 }
 0x43f   : > { %4470 = vst [vmem:[#allocation10_spill] sm:$0xff] %v3660_v56 }
 0x440   : > { %v3662_v61 = vpop.f32.mrf.mxu0  ;;  %2920 = vmatmul.mubr.msk.bf16.gmra.mxu0 %vm1262_vm4, %v1250_v55  ;;  %v1719_v55 = vmax.f32 %v3652_v54, %v3656_v49 }
 0x441   : > { %4471 = vst [vmem:[#allocation11_spill] sm:$0xff] %v3662_v61  ;;  %1658 = vmatprep.mubr.bf16.mxu0 %v3269_v28 }
 0x442   : > { %v3666_v43 = vpop.f32.mrf.mxu0 }
 0x443   : > { %v1725_v48 = vmax.f32 %v3662_v61, %v3666_v43 }
 0x444   : > { %v3668_v44 = vpop.f32.mrf.mxu0 }
 0x446   : > { %v3670_v42 = vpop.f32.mrf.mxu0 }
 0x448   : > { %v3672_v45 = vpop.f32.mrf.mxu0  ;;  %2921 = vmatmul.mubr.msk.bf16.gmra.mxu0 %vm1262_vm4, %v1251_v41  ;;  %v1728_v41 = vmax.f32 %v3668_v44, %v3670_v42 }
 0x449   : > { %1668 = vmatprep.mubr.bf16.mxu0 %v3269_v28 }
 0x44a   : > { %v3676_v46 = vpop.f32.mrf.mxu0 }
 0x44b   : > { %v1731_v58 = vmax.f32 %v3672_v45, %v3676_v46 }
 0x44c   : > { %v3678_v62 = vpop.f32.mrf.mxu0 }
 0x44e   : > { %v3680_v0 = vpop.f32.mrf.mxu0 }
 0x44f   : > { %v1734_v53 = vmax.f32 %v3678_v62, %v3680_v0 }
 0x450   : > { %v3682_v1 = vpop.f32.mrf.mxu0  ;;  %2922 = vmatmul.mubr.msk.bf16.gmra.mxu0 %vm1262_vm4, %v1252_v63 }
 0x451   : > { %1678 = vmatprep.mubr.bf16.mxu0 %v3269_v28 }
 0x452   : > { %v3686_v2 = vpop.f32.mrf.mxu0 }
 0x453   : > { %v1737_v37 = vmax.f32 %v3682_v1, %v3686_v2 }
 0x454   : > { %v3688_v3 = vpop.f32.mrf.mxu0 }
 0x456   : > { %v3690_v5 = vpop.f32.mrf.mxu0 }
 0x457   : > { %v1740_v59 = vmax.f32 %v3688_v3, %v3690_v5 }
 0x458   : > { %v3692_v6 = vpop.f32.mrf.mxu0  ;;  %2923 = vmatmul.mubr.msk.bf16.gmra.mxu0 %vm1262_vm4, %v1253_v4 }
 0x459   : > { %1688 = vmatprep.mubr.bf16.mxu0 %v3269_v28 }
 0x45a   : > { %v3696_v7 = vpop.f32.mrf.mxu0 }
 0x45b   : > { %v1743_v33 = vmax.f32 %v3692_v6, %v3696_v7 }
 0x45c   : > { %v3698_v40 = vpop.f32.mrf.mxu0 }
 0x45e   : > { %v3700_v9 = vpop.f32.mrf.mxu0 }
 0x45f   : > { %v1746_v38 = vmax.f32 %v3698_v40, %v3700_v9 }
 0x460   : > { %v3702_v10 = vpop.f32.mrf.mxu0  ;;  %2924 = vmatmul.mubr.msk.bf16.gmra.mxu0 %vm1262_vm4, %v1254_v8  ;;  %v1722_v8 = vmax.f32 %v3658_v50, %v3660_v56 }
 0x461   : > { %1698 = vmatprep.mubr.bf16.mxu0 %v3269_v28 }
 0x462   : > { %v3706_v11 = vpop.f32.mrf.mxu0 }
 0x463   : > { %v1749_v29 = vmax.f32 %v3702_v10, %v3706_v11 }
 0x464   : > { %v3708_v12 = vpop.f32.mrf.mxu0 }
 0x466   : > { %v3710_v14 = vpop.f32.mrf.mxu0 }
 0x467   : > { %v1752_v34 = vmax.f32 %v3708_v12, %v3710_v14 }
 0x468   : > { %v3712_v15 = vpop.f32.mrf.mxu0  ;;  %2925 = vmatmul.mubr.msk.bf16.gmra.mxu0 %vm1262_vm4, %v1255_v13 }
 0x469   : > { %1708 = vmatprep.mubr.bf16.mxu0 %v3269_v28 }
 0x46a   : > { %v3716_v16 = vpop.f32.mrf.mxu0 }
 0x46b   : > { %v1755_v24 = vmax.f32 %v3712_v15, %v3716_v16 }
 0x46c   : > { %v3718_v17 = vpop.f32.mrf.mxu0 }
 0x46e   : > { %v3720_v19 = vpop.f32.mrf.mxu0 }
 0x46f   : > { %v1758_v30 = vmax.f32 %v3718_v17, %v3720_v19 }
 0x470   : > { %v3722_v20 = vpop.f32.mrf.mxu0  ;;  %2926 = vmatmul.mubr.msk.bf16.gmra.mxu0 %vm1262_vm4, %v1256_v18 }
 0x472   : > { %v3725_v21 = vpop.f32.mrf.mxu0 }
 0x473   : > { %v1761_v22 = vmax.f32 %v3722_v20, %v3725_v21 }
 0x474   : > { %v3729_v23 = vpop.f32.mrf.mxu0 }
 0x475   : > { %1762 = vmax.xlane.f32.xlu0 %v1761_v22 }
 0x476   : > { %v3731_v28 = vpop.f32.mrf.mxu0 }
 0x477   : > { %v1764_v25 = vmax.f32 %v3729_v23, %v3731_v28 }
 0x478   : > { %v3737_v26 = vpop.f32.mrf.mxu0 }
 0x479   : > { %4472 = vst [vmem:[#allocation12_spill] sm:$0xff] %v3737_v26  ;;  %1756 = vmax.xlane.f32.xlu0 %v1755_v24  ;;  %1765 = vmax.xlane.f32.xlu1 %v1764_v25 }
 0x47a   : > { %v3739_v27 = vpop.f32.mrf.mxu0 }
 0x47b   : > { %4473 = vst [vmem:[#allocation13_spill] sm:$0xff] %v3739_v27 }
 0x47c   : > { %v3745_v31 = vpop.f32.mrf.mxu0 }
 0x47d   : > { %4474 = vst [vmem:[#allocation14_spill] sm:$0xff] %v3745_v31  ;;  %1750 = vmax.xlane.f32.xlu0 %v1749_v29  ;;  %1759 = vmax.xlane.f32.xlu1 %v1758_v30 }
 0x47e   : > { %v3747_v32 = vpop.f32.mrf.mxu0 }
 0x47f   : > { %4475 = vst [vmem:[#allocation15_spill] sm:$0xff] %v3747_v32 }
 0x480   : > { %v3753_v35 = vpop.f32.mrf.mxu0 }
 0x481   : > { %4476 = vst [vmem:[#allocation16_spill] sm:$0xff] %v3753_v35  ;;  %1744 = vmax.xlane.f32.xlu0 %v1743_v33  ;;  %1753 = vmax.xlane.f32.xlu1 %v1752_v34 }
 0x482   : > { %v3755_v36 = vpop.f32.mrf.mxu0 }
 0x483   : > { %4477 = vst [vmem:[#allocation17_spill] sm:$0xff] %v3755_v36 }
 0x484   : > { %v3761_v39 = vpop.f32.mrf.mxu0 }
 0x485   : > { %4478 = vst [vmem:[#allocation18_spill] sm:$0xff] %v3761_v39  ;;  %1738 = vmax.xlane.f32.xlu0 %v1737_v37  ;;  %1747 = vmax.xlane.f32.xlu1 %v1746_v38 }
 0x486   : > { %v3763_v57 = vpop.f32.mrf.mxu0 }
 0x487   : > { %4479 = vst [vmem:[#allocation19_spill] sm:$0xff] %v3763_v57 }
 0x488   : > { %v3769_v60 = vpop.f32.mrf.mxu0 }
 0x489   : > { %4480 = vst [vmem:[#allocation20_spill] sm:$0xff] %v3769_v60  ;;  %1732 = vmax.xlane.f32.xlu0 %v1731_v58  ;;  %1741 = vmax.xlane.f32.xlu1 %v1740_v59 }
 0x48a   : > { %v3771_v47 = vpop.f32.mrf.mxu0 }
 0x48b   : > { %4481 = vst [vmem:[#allocation21_spill] sm:$0xff] %v3771_v47 }
 0x48c   : > { %v3777_v51 = vpop.f32.mrf.mxu0 }
 0x48d   : > { %4482 = vst [vmem:[#allocation22_spill] sm:$0xff] %v3777_v51  ;;  %1726 = vmax.xlane.f32.xlu0 %v1725_v48  ;;  %1735 = vmax.xlane.f32.xlu1 %v1734_v53 }
 0x48e   : > { %v3779_v52 = vpop.f32.mrf.mxu0 }
 0x48f   : > { %4483 = vst [vmem:[#allocation23_spill] sm:$0xff] %v3779_v52 }
 0x490   : > { %v3785_v63 = vpop.f32.mrf.mxu0 }
 0x491   : > { %4484 = vst [vmem:[#allocation24_spill] sm:$0xff] %v3785_v63  ;;  %1720 = vmax.xlane.f32.xlu0 %v1719_v55  ;;  %1729 = vmax.xlane.f32.xlu1 %v1728_v41 }
 0x492   : > { %v3787_v4 = vpop.f32.mrf.mxu0 }
 0x493   : > { %4485 = vst [vmem:[#allocation25_spill] sm:$0xff] %v3787_v4 }
 0x494   : > { %v3791_v13 = vpop.f32.mrf.mxu0 }
 0x495   : > { %4486 = vst [vmem:[#allocation26_spill] sm:$0xff] %v3791_v13  ;;  %1723 = vmax.xlane.f32.xlu1 %v1722_v8 }
 0x496   : > { %v3793_v18 = vpop.f32.mrf.mxu0 }
 0x497   : > { %4487 = vst [vmem:[#allocation27_spill] sm:$0xff] %v3793_v18 }
 0x498   : > { %v3795_v22 = vpop.f32.mrf.mxu0 }
 0x499   : > { %4488 = vst [vmem:[#allocation28_spill] sm:$0xff] %v3795_v22 }
 0x49a   : > { %v3797_v24 = vpop.f32.mrf.mxu0 }
 0x49b   : > { %4489 = vst [vmem:[#allocation29_spill] sm:$0xff] %v3797_v24 }
 0x49c   : > { %v3799_v25 = vpop.f32.mrf.mxu0 }
 0x49d   : > { %4490 = vst [vmem:[#allocation30_spill] sm:$0xff] %v3799_v25 }
 0x49e   : > { %v3801_v29 = vpop.f32.mrf.mxu0 }
 0x49f   : > { %4491 = vst [vmem:[#allocation31_spill] sm:$0xff] %v3801_v29 }
 0x4a0   : > { %v3803_v30 = vpop.f32.mrf.mxu0 }
 0x4a1   : > { %4492 = vst [vmem:[#allocation32_spill] sm:$0xff] %v3803_v30 }
 0x4a2   : > { %v3805_v33 = vpop.f32.mrf.mxu0 }
 0x4a3   : > { %4493 = vst [vmem:[#allocation33_spill] sm:$0xff] %v3805_v33 }
 0x4a4   : > { %v3807_v34 = vpop.f32.mrf.mxu0 }
 0x4a5   : > { %4494 = vst [vmem:[#allocation34_spill] sm:$0xff] %v3807_v34 }
 0x4a6   : > { %v3809_v37 = vpop.f32.mrf.mxu0 }
 0x4a7   : > { %4495 = vst [vmem:[#allocation35_spill] sm:$0xff] %v3809_v37 }
 0x4a8   : > { %v3811_v38 = vpop.f32.mrf.mxu0 }
 0x4a9   : > { %4496 = vst [vmem:[#allocation36_spill] sm:$0xff] %v3811_v38 }
 0x4aa   : > { %v3813_v58 = vpop.f32.mrf.mxu0 }
 0x4ab   : > { %4497 = vst [vmem:[#allocation37_spill] sm:$0xff] %v3813_v58  ;;  %v1803_v50 = vmax.f32 %v3811_v38, %v3813_v58  ;;  %v1791_v58 = vmax.f32 %v3795_v22, %v3797_v24  ;;  %v1779_v24 = vmax.f32 %v3769_v60, %v3771_v47  ;;  %v1767_v47 = vmax.f32 %v3737_v26, %v3739_v27 }
 0x4ac   : > { %v3815_v59 = vpop.f32.mrf.mxu0 }
 0x4ad   : > { %4498 = vst [vmem:[#allocation38_spill] sm:$0xff] %v3815_v59 }
 0x4ae   : > { %v3817_v48 = vpop.f32.mrf.mxu0 }
 0x4af   : > { %4499 = vst [vmem:[#allocation39_spill] sm:$0xff] %v3817_v48 }
 0x4b0   : > { %v3819_v53 = vpop.f32.mrf.mxu0 }
 0x4b1   : > { %4500 = vst [vmem:[#allocation40_spill] sm:$0xff] %v3819_v53 }
 0x4b2   : > { %v3821_v55 = vpop.f32.mrf.mxu0 }
 0x4b3   : > { %4501 = vst [vmem:[#allocation41_spill] sm:$0xff] %v3821_v55  ;;  %v1809_v41 = vmax.f32 %v3819_v53, %v3821_v55  ;;  %v1797_v55 = vmax.f32 %v3803_v30, %v3805_v33  ;;  %v1785_v33 = vmax.f32 %v3785_v63, %v3787_v4  ;;  %v1773_v4 = vmax.f32 %v3753_v35, %v3755_v36 }
 0x4b4   : > { %v3825_v8 = vpop.f32.mrf.mxu0  ;;  %v1770_v36 = vmax.f32 %v3745_v31, %v3747_v32 }
 0x4b5   : > { %4502 = vst [vmem:[#allocation42_spill] sm:$0xff] %v3825_v8  ;;  %1810 = vmax.xlane.f32.xlu0 %v1809_v41  ;;  %v1806_v41 = vmax.f32 %v3815_v59, %v3817_v48 }
 0x4b6   : > { %v3827_v54 = vpop.f32.mrf.mxu0 }
 0x4b7   : > { %4503 = vst [vmem:[#allocation43_spill] sm:$0xff] %v3827_v54  ;;  %v1812_v49 = vmax.f32 %v3825_v8, %v3827_v54 }
 0x4b8   : > { %v3833_v61 = vpop.f32.mrf.mxu0 }
 0x4b9   : > { %4504 = vst [vmem:[#allocation44_spill] sm:$0xff] %v3833_v61  ;;  %1804 = vmax.xlane.f32.xlu0 %v1803_v50  ;;  %1813 = vmax.xlane.f32.xlu1 %v1812_v49  ;;  %v1800_v49 = vmax.f32 %v3807_v34, %v3809_v37 }
 0x4ba   : > { %v3835_v56 = vpop.f32.mrf.mxu0 }
 0x4bc   : > { %v3841_v53 = vpop.f32.mrf.mxu0 }
 0x4bd   : > { %1798 = vmax.xlane.f32.xlu0 %v1797_v55  ;;  %1807 = vmax.xlane.f32.xlu1 %v1806_v41  ;;  %v1794_v55 = vmax.f32 %v3799_v25, %v3801_v29 }
 0x4be   : > { %v3843_v38 = vpop.f32.mrf.mxu0 }
 0x4c0   : > { %v3849_v50 = vpop.f32.mrf.mxu0 }
 0x4c1   : > { %1792 = vmax.xlane.f32.xlu0 %v1791_v58  ;;  %1801 = vmax.xlane.f32.xlu1 %v1800_v49  ;;  %v1788_v58 = vmax.f32 %v3791_v13, %v3793_v18 }
 0x4c2   : > { %v3851_v30 = vpop.f32.mrf.mxu0 }
 0x4c4   : > { %v3857_v41 = vpop.f32.mrf.mxu0 }
 0x4c5   : > { %1786 = vmax.xlane.f32.xlu0 %v1785_v33  ;;  %1795 = vmax.xlane.f32.xlu1 %v1794_v55  ;;  %v1782_v33 = vmax.f32 %v3777_v51, %v3779_v52 }
 0x4c6   : > { %v3859_v22 = vpop.f32.mrf.mxu0 }
 0x4c8   : > { %v3865_v49 = vpop.f32.mrf.mxu0 }
 0x4c9   : > { %1780 = vmax.xlane.f32.xlu0 %v1779_v24  ;;  %1789 = vmax.xlane.f32.xlu1 %v1788_v58  ;;  %v1776_v24 = vmax.f32 %v3761_v39, %v3763_v57 }
 0x4ca   : > { %v3867_v63 = vpop.f32.mrf.mxu0 }
 0x4cc   : > { %v3873_v55 = vpop.f32.mrf.mxu0 }
 0x4cd   : > { %1774 = vmax.xlane.f32.xlu0 %v1773_v4  ;;  %1783 = vmax.xlane.f32.xlu1 %v1782_v33 }
 0x4ce   : > { %v3875_v60 = vpop.f32.mrf.mxu0 }
 0x4d0   : > { %v3881_v58 = vpop.f32.mrf.mxu0 }
 0x4d1   : > { %4505 = vst [vmem:[#allocation45_spill] sm:$0xff] %v3881_v58  ;;  %1768 = vmax.xlane.f32.xlu0 %v1767_v47  ;;  %1777 = vmax.xlane.f32.xlu1 %v1776_v24 }
 0x4d2   : > { %v3883_v35 = vpop.f32.mrf.mxu0 }
 0x4d3   : > { %4506 = vst [vmem:[#allocation46_spill] sm:$0xff] %v3883_v35 }
 0x4d4   : > { %v3887_v51 = vpop.f32.mrf.mxu0 }
 0x4d5   : > { %1771 = vmax.xlane.f32.xlu1 %v1770_v36 }
 0x4d6   : > { %v3889_v4 = vpop.f32.mrf.mxu0 }
 0x4d8   : > { %v3891_v33 = vpop.f32.mrf.mxu0 }
 0x4d9   : > { %4507 = vst [vmem:[#allocation47_spill] sm:$0xff] %v3891_v33 }
 0x4da   : > { %v3893_v26 = vpop.f32.mrf.mxu0 }
 0x4db   : > { %4508 = vst [vmem:[#allocation48_spill] sm:$0xff] %v3893_v26 }
 0x4dc   : > { %v3895_v27 = vpop.f32.mrf.mxu0 }
 0x4dd   : > { %4509 = vst [vmem:[#allocation49_spill] sm:$0xff] %v3895_v27 }
 0x4de   : > { %v3897_v39 = vpop.f32.mrf.mxu0 }
 0x4e0   : > { %v3899_v47 = vpop.f32.mrf.mxu0 }
 0x4e1   : > { %4510 = vst [vmem:[#allocation50_spill] sm:$0xff] %v3899_v47 }
 0x4e2   : > { %v3901_v24 = vpop.f32.mrf.mxu0 }
 0x4e3   : > { %4511 = vst [vmem:[#allocation51_spill] sm:$0xff] %v3901_v24 }
 0x4e4   : > { %v3903_v57 = vpop.f32.mrf.mxu0 }
 0x4e5   : > { %4512 = vst [vmem:[#allocation52_spill] sm:$0xff] %v3903_v57 }
 0x4e6   : > { %v3905_v31 = vpop.f32.mrf.mxu0 }
 0x4e7   : > { %4513 = vst [vmem:[#allocation53_spill] sm:$0xff] %v3905_v31 }
 0x4e8   : > { %v3907_v32 = vpop.f32.mrf.mxu0 }
 0x4e9   : > { %4514 = vst [vmem:[#allocation54_spill] sm:$0xff] %v3907_v32 }
 0x4ea   : > { %v3909_v36 = vpop.f32.mrf.mxu0 }
 0x4eb   : > { %4515 = vst [vmem:[#allocation55_spill] sm:$0xff] %v3909_v36  ;;  %v1851_v48 = vmax.f32 %v3907_v32, %v3909_v36 }
 0x4ec   : > { %v3911_v52 = vpop.f32.mrf.mxu0 }
 0x4ed   : > { %4516 = vst [vmem:[#allocation56_spill] sm:$0xff] %v3911_v52 }
 0x4ee   : > { %v3913_v13 = vpop.f32.mrf.mxu0 }
 0x4ef   : > { %4517 = vst [vmem:[#allocation57_spill] sm:$0xff] %v3913_v13 }
 0x4f0   : > { %v3915_v18 = vpop.f32.mrf.mxu0 }
 0x4f1   : > { %4518 = vst [vmem:[#allocation58_spill] sm:$0xff] %v3915_v18 }
 0x4f2   : > { %v3917_v25 = vpop.f32.mrf.mxu0 }
 0x4f3   : > { %4519 = vst [vmem:[#allocation59_spill] sm:$0xff] %v3917_v25  ;;  %v1857_v29 = vmax.f32 %v3915_v18, %v3917_v25  ;;  %v1845_v25 = vmax.f32 %v3899_v47, %v3901_v24  ;;  %v1833_v24 = vmax.f32 %v3881_v58, %v3883_v35 }
 0x4f4   : > { %v3921_v34 = vpop.f32.mrf.mxu0 }
 0x4f5   : > { %1858 = vmax.xlane.f32.xlu0 %v1857_v29  ;;  %v1854_v29 = vmax.f32 %v3911_v52, %v3913_v13 }
 0x4f6   : > { %v3923_v37 = vpop.f32.mrf.mxu0 }
 0x4f7   : > { %4520 = vst [vmem:[#allocation60_spill] sm:$0xff] %v3923_v37  ;;  %v1860_v59 = vmax.f32 %v3921_v34, %v3923_v37  ;;  %v1839_v37 = vmax.f32 %v3891_v33, %v3893_v26 }
 0x4f8   : > { %v3929_v54 = vpop.f32.mrf.mxu0 }
 0x4f9   : > { %4521 = vst [vmem:[#allocation61_spill] sm:$0xff] %v3929_v54  ;;  %1852 = vmax.xlane.f32.xlu0 %v1851_v48  ;;  %1861 = vmax.xlane.f32.xlu1 %v1860_v59  ;;  %v1848_v59 = vmax.f32 %v3903_v57, %v3905_v31 }
 0x4fa   : > { %v3931_v8 = vpop.f32.mrf.mxu0 }
 0x4fb   : > { %4522 = vst [vmem:[#allocation62_spill] sm:$0xff] %v3931_v8 }
 0x4fc   : > { %v3937_v18 = vpop.f32.mrf.mxu0 }
 0x4fd   : > { %4523 = vst [vmem:[#allocation63_spill] sm:$0xff] %v3937_v18  ;;  %1846 = vmax.xlane.f32.xlu0 %v1845_v25  ;;  %1855 = vmax.xlane.f32.xlu1 %v1854_v29  ;;  %v1842_v25 = vmax.f32 %v3895_v27, %v3897_v39 }
 0x4fe   : > { %v1763_v32 = vpop.xlane.xlu0 %1762  ;;  %v3939_v36 = vpop.f32.mrf.mxu0 }
 0x4ff   : > { %4524 = vst [vmem:[#allocation64_spill] sm:$0xff] %v3939_v36  ;;  %v1939_v29 = vsub.f32 %v3722_v20, %v1763_v32  ;;  %v1940_v13 = vsub.f32 %v3725_v21, %v1763_v32  ;;  %v1827_v21 = vmax.f32 %v3865_v49, %v3867_v63 }
 0x500   : > { %v3945_v48 = vpop.f32.mrf.mxu0 }
 0x501   : > { %4525 = vst [vmem:[#allocation65_spill] sm:$0xff] %v3945_v48  ;;  %1840 = vmax.xlane.f32.xlu0 %v1839_v37  ;;  %1849 = vmax.xlane.f32.xlu1 %v1848_v59 }
 0x502   : > { %v1766_v47 = vpop.xlane.xlu1 %1765  ;;  %v1757_v52 = vpop.xlane.xlu0 %1756 }
 0x503   : > { %v1941_v33 = vsub.f32 %v3729_v23, %v1766_v47  ;;  %v1942_v26 = vsub.f32 %v3731_v28, %v1766_v47  ;;  %v3955_v57 = vpop.f32.mrf.mxu0  ;;  %v1836_v23 = vmax.f32 %v3887_v51, %v3889_v4  ;;  %v1936_v28 = vsub.f32 %v3716_v16, %v1757_v52 }
 0x504   : > { %v1821_v16 = vmax.f32 %v3849_v50, %v3851_v30 }
 0x505   : > { %v2053_v37 = vpack.c.bf16 %v1941_v33, %v1939_v29  ;;  %v2054_v59 = vpack.c.bf16 %v1942_v26, %v1940_v13  ;;  %v3957_v31 = vpop.f32.mrf.mxu0  ;;  %1834 = vmax.xlane.f32.xlu0 %v1833_v24  ;;  %1843 = vmax.xlane.f32.xlu1 %v1842_v25  ;;  %v1935_v13 = vsub.f32 %v3712_v15, %v1757_v52 }
 0x506   : > { %v1760_v58 = vpop.xlane.xlu1 %1759  ;;  %v1751_v33 = vpop.xlane.xlu0 %1750 }
 0x507   : > { %v2146_v35 = vmul.bf16 1069105081, %v2053_v37  ;;  %v1937_v27 = vsub.f32 %v3718_v17, %v1760_v58  ;;  %v3960_v20 = vpop.f32.mrf.mxu0  ;;  %v1938_v26 = vsub.f32 %v3720_v19, %v1760_v58  ;;  %v2149_v32 = vmul.bf16 1069105081, %v2054_v59 }
 0x508   : > { %v1830_v19 = vmax.f32 %v3873_v55, %v3875_v60  ;;  %v1932_v15 = vsub.f32 %v3706_v11, %v1751_v33  ;;  %v1824_v11 = vmax.f32 %v3857_v41, %v3859_v22 }
 0x509   : > { %3043 = vpow.bf16 %v2146_v35  ;;  %v3969_v47 = vpop.f32.mrf.mxu0  ;;  %1828 = vmax.xlane.f32.xlu0 %v1827_v21  ;;  %1837 = vmax.xlane.f32.xlu1 %v1836_v23  ;;  %v2052_v17 = vpack.c.bf16 %v1938_v26, %v1936_v28  ;;  %v2051_v25 = vpack.c.bf16 %v1937_v27, %v1935_v13  ;;  %v1815_v26 = vmax.f32 %v3833_v61, %v3835_v56 }
 0x50a   : > { %v1754_v24 = vpop.xlane.xlu1 %1753  ;;  %3045 = vpow.bf16 %v2149_v32  ;;  %v1745_v21 = vpop.xlane.xlu0 %1744  ;;  %v1931_v13 = vsub.f32 %v3702_v10, %v1751_v33 }
 0x50b   : > { %v3971_v29 = vpop.f32.mrf.mxu0  ;;  %v2143_v35 = vmul.bf16 1069105081, %v2052_v17  ;;  %v1934_v52 = vsub.f32 %v3710_v14, %v1754_v24  ;;  %v2140_v59 = vmul.bf16 1069105081, %v2051_v25  ;;  %v1933_v23 = vsub.f32 %v3708_v12, %v1754_v24 }
 0x50c   : > { %v1928_v25 = vsub.f32 %v3696_v7, %v1745_v21  ;;  %v4002_v7 = vld [vmem:[#allocation3 + $0x34] ss:$-48 sps:$4 sm:$0xff]  }
 0x50d   : > { %v3979_v58 = vpop.f32.mrf.mxu0  ;;  %1822 = vmax.xlane.f32.xlu0 %v1821_v16  ;;  %1831 = vmax.xlane.f32.xlu1 %v1830_v19  ;;  %3047 = vpow.bf16 %v2143_v35  ;;  %v2050_v37 = vpack.c.bf16 %v1934_v52, %v1932_v15  ;;  %v2049_v12 = vpack.c.bf16 %v1933_v23, %v1931_v13  ;;  %v1818_v16 = vmax.f32 %v3841_v53, %v3843_v38 }
 0x50e   : > { %v1748_v27 = vpop.xlane.xlu1 %1747  ;;  %3049 = vpow.bf16 %v2140_v59  ;;  %v1739_v33 = vpop.xlane.xlu0 %1738  ;;  %4527 = vst [vmem:[#allocation67_spill] sm:$0xff] %v4002_v7  ;;  %2383 = vmatprep.mubr.bf16.mxu1 %v4002_v7  ;;  %v4531_v7 = vld [vmem:[#allocation10_spill] sm:$0xff] }
 0x50f   : > { %v3982_v28 = vpop.f32.mrf.mxu0  ;;  %v2137_v14 = vmul.bf16 1069105081, %v2050_v37  ;;  %v1930_v32 = vsub.f32 %v3700_v9, %v1748_v27  ;;  %v2134_v10 = vmul.bf16 1069105081, %v2049_v12  ;;  %v1929_v52 = vsub.f32 %v3698_v40, %v1748_v27 }
 0x511   : > { %v3990_v17 = vpop.f32.mrf.mxu0  ;;  %1816 = vmax.xlane.f32.xlu0 %v1815_v26  ;;  %1825 = vmax.xlane.f32.xlu1 %v1824_v11  ;;  %3051 = vpow.bf16 %v2137_v14  ;;  %v2048_v19 = vpack.c.bf16 %v1930_v32, %v1928_v25  ;;  %v1927_v11 = vsub.f32 %v3692_v6, %v1745_v21  ;;  %v1924_v32 = vsub.f32 %v3686_v2, %v1739_v33 }
 0x512   : > { %4526 = vst [vmem:[#allocation66_spill] sm:$0xff] %v3990_v17  ;;  %v1742_v15 = vpop.xlane.xlu1 %1741  ;;  %3053 = vpow.bf16 %v2134_v10  ;;  %v1733_v6 = vpop.xlane.xlu0 %1732  ;;  %v1923_v10 = vsub.f32 %v3682_v1, %v1739_v33 }
 0x513   : > { %v3993_v24 = vpop.f32.mrf.mxu0  ;;  %v2131_v23 = vmul.bf16 1069105081, %v2048_v19  ;;  %v1926_v26 = vsub.f32 %v3690_v5, %v1742_v15  ;;  %v2047_v40 = vpack.c.bf16 %v1929_v52, %v1927_v11  ;;  %v1925_v21 = vsub.f32 %v3688_v3, %v1742_v15 }
 0x515   : > { %v3997_v35 = vpop.f32.mrf.mxu0  ;;  %1819 = vmax.xlane.f32.xlu1 %v1818_v16  ;;  %3055 = vpow.bf16 %v2131_v23  ;;  %v2046_v25 = vpack.c.bf16 %v1926_v26, %v1924_v32  ;;  %v2128_v5 = vmul.bf16 1069105081, %v2047_v40  ;;  %v1920_v26 = vsub.f32 %v3676_v46, %v1733_v6 }
 0x516   : > { %v1736_v12 = vpop.xlane.xlu1 %1735  ;;  %v2045_v11 = vpack.c.bf16 %v1925_v21, %v1923_v10 }
 0x517   : > { %v3044_v9 = vpop.eup %3043  ;;  %v4000_v37 = vpop.f32.mrf.mxu0  ;;  %v1922_v2 = vsub.f32 %v3680_v0, %v1736_v12  ;;  %3057 = vpow.bf16 %v2128_v5  ;;  %v1921_v1 = vsub.f32 %v3678_v62, %v1736_v12  ;;  %v1919_v5 = vsub.f32 %v3672_v45, %v1733_v6 }
 0x518   : > { %v3046_v59 = vpop.eup %3045  ;;  %v2122_v0 = vmul.bf16 1069105081, %v2045_v11 }
 0x519   : > { %v4006_v14 = vpop.f32.mrf.mxu0  ;;  %2351 = vmatprep.subr.bf16.mxu1 %v3046_v59  ;;  %v2125_v59 = vmul.bf16 1069105081, %v2046_v25  ;;  %v2044_v3 = vpack.c.bf16 %v1922_v2, %v1920_v26  ;;  %v2043_v2 = vpack.c.bf16 %v1921_v1, %v1919_v5 }
 0x51a   : > { %4528 = vst [vmem:[#allocation68_spill] sm:$0xff] %v4006_v14  ;;  %2352 = vmatpush1.bf16.xpose.msra.mxu1 %v3044_v9  ;;  %v1730_v15 = vpop.xlane.xlu1 %1729 }
 0x51b   : > { %v4010_v27 = vpop.f32.mrf.mxu0  ;;  %v3048_v13 = vpop.eup %3047  ;;  %3059 = vpow.bf16 %v2125_v59  ;;  %v2119_v25 = vmul.bf16 1069105081, %v2044_v3  ;;  %v1918_v46 = vsub.f32 %v3670_v42, %v1730_v15  ;;  %v2116_v42 = vmul.bf16 1069105081, %v2043_v2 }
 0x51c   : > { %4529 = vst [vmem:[#allocation69_spill] sm:$0xff] %v4010_v27  ;;  %2353 = vmatprep.subr.bf16.mxu1 %v3048_v13  ;;  %v3050_v9 = vpop.eup %3049  ;;  %v1727_v13 = vpop.xlane.xlu0 %1726  ;;  %3061 = vpow.bf16 %v2122_v0  ;;  %v1917_v45 = vsub.f32 %v3668_v44, %v1730_v15  ;;  %v4532_v0 = vld [vmem:[#allocation11_spill] sm:$0xff] }
 0x51d   : > { %v4012_v16 = vpop.f32.mrf.mxu0  ;;  %v1916_v59 = vsub.f32 %v3666_v43, %v1727_v13  ;;  %3063 = vpow.bf16 %v2119_v25  ;;  %v1915_v1 = vsub.f32 %v4532_v0, %v1727_v13  ;;  %v4533_v25 = vld [vmem:[#allocation8_spill] sm:$0xff] }
 0x51e   : > { %v1724_v12 = vpop.xlane.xlu1 %1723  ;;  %3065 = vpow.bf16 %v2116_v42 }
 0x51f   : > { %v4015_v19 = vpop.f32.mrf.mxu0  ;;  %v3052_v23 = vpop.eup %3051  ;;  %v2042_v62 = vpack.c.bf16 %v1918_v46, %v1916_v59  ;;  %v1914_v43 = vsub.f32 %v4531_v7, %v1724_v12  ;;  %v2041_v59 = vpack.c.bf16 %v1917_v45, %v1915_v1 }
 0x520   : > { %v1721_v11 = vpop.xlane.xlu0 %1720 }
 0x521   : > { %v4019_v52 = vpop.f32.mrf.mxu0  ;;  %v2113_v3 = vmul.bf16 1069105081, %v2042_v62  ;;  %v1912_v46 = vsub.f32 %v4533_v25, %v1721_v11  ;;  %v2110_v13 = vmul.bf16 1069105081, %v2041_v59  ;;  %v4534_v62 = vld [vmem:[#allocation9_spill] sm:$0xff] }
 0x522   : > { %4530 = vst [vmem:[#allocation70_spill] sm:$0xff] %v4019_v52  ;;  %2354 = vmatpush1.bf16.xpose.msra.mxu1 %v3050_v9  ;;  %v3054_v9 = vpop.eup %3053  ;;  %v1913_v0 = vsub.f32 %v4534_v62, %v1724_v12 }
 0x523   : > { %v4022_v32 = vpop.f32.mrf.mxu0  ;;  %2355 = vmatprep.subr.bf16.mxu1 %v3052_v23  ;;  %v3056_v10 = vpop.eup %3055  ;;  %3067 = vpow.bf16 %v2113_v3  ;;  %v2040_v44 = vpack.c.bf16 %v1914_v43, %v1912_v46  ;;  %v4535_v43 = vld [vmem:[#allocation7_spill] sm:$0xff] }
 0x524   : > { %3069 = vpow.bf16 %v2110_v13  ;;  %v1893_v12 = vmax.f32 %v4019_v52, %v4022_v32 }
 0x525   : > { %v4024_v40 = vpop.f32.mrf.mxu0  ;;  %v2107_v25 = vmul.bf16 1069105081, %v2040_v44 }
 0x527   : > { %v4027_v33 = vpop.f32.mrf.mxu0  ;;  %3071 = vpow.bf16 %v2107_v25  ;;  %v4536_v25 = vld [vmem:[#allocation40_spill] sm:$0xff] }
 0x528   : > { %v1896_v13 = vmax.f32 %v4024_v40, %v4027_v33 }
 0x529   : > { %v4031_v21 = vpop.f32.mrf.mxu0 }
 0x52a   : > { %2356 = vmatpush1.bf16.xpose.msra.mxu1 %v3054_v9  ;;  %v3058_v9 = vpop.eup %3057 }
 0x52b   : > { %v4034_v23 = vpop.f32.mrf.mxu0  ;;  %2357 = vmatprep.subr.bf16.mxu1 %v3056_v10  ;;  %v3060_v10 = vpop.eup %3059 }
 0x52c   : > { %v1899_v45 = vmax.f32 %v4031_v21, %v4034_v23  ;;  %v3062_v3 = vpop.eup %3061 }
 0x52d   : > { %v4036_v26 = vpop.f32.mrf.mxu0  ;;  %v3064_v1 = vpop.eup %3063 }
 0x52f   : > { %v4039_v6 = vpop.f32.mrf.mxu0 }
 0x530   : > { %v1902_v46 = vmax.f32 %v4036_v26, %v4039_v6 }
 0x531   : > { %v4043_v5 = vpop.f32.mrf.mxu0 }
 0x532   : > { %2358 = vmatpush1.bf16.xpose.msra.mxu1 %v3058_v9  ;;  %v1911_v9 = vsub.f32 %v4535_v43, %v1721_v11  ;;  %v1887_v11 = vmax.f32 %v4006_v14, %v4010_v27  ;;  %v4541_v27 = vld [vmem:[#allocation37_spill] sm:$0xff] }
 0x533   : > { %v4046_v2 = vpop.f32.mrf.mxu0  ;;  %2359 = vmatprep.subr.bf16.mxu1 %v3060_v10 }
 0x534   : > { %v1905_v15 = vmax.f32 %v4043_v5, %v4046_v2  ;;  %v2039_v10 = vpack.c.bf16 %v1913_v0, %v1911_v9  ;;  %v4538_v9 = vld [vmem:[#allocation41_spill] sm:$0xff] }
 0x535   : > { %v4050_v7 = vpop.f32.mrf.mxu0 }
 0x536   : > { %1906 = vmax.xlane.f32.xlu0 %v1905_v15  ;;  %v2104_v44 = vmul.bf16 1069105081, %v2039_v10  ;;  %v3066_v15 = vpop.eup %3065  ;;  %v4539_v10 = vld [vmem:[#allocation43_spill] sm:$0xff] }
 0x537   : > { %v4053_v61 = vpop.f32.mrf.mxu0  ;;  %v3068_v62 = vpop.eup %3067 }
 0x538   : > { %v1908_v42 = vmax.f32 %v4050_v7, %v4053_v61  ;;  %3073 = vpow.bf16 %v2104_v44 }
 0x53a   : > { %2360 = vmatpush1.bf16.xpose.msra.mxu1 %v3062_v3  ;;  %1900 = vmax.xlane.f32.xlu0 %v1899_v45  ;;  %v4537_v3 = vld [vmem:[#allocation42_spill] sm:$0xff] }
 0x53b   : > { %1909 = vmax.xlane.f32.xlu1 %v1908_v42  ;;  %2361 = vmatprep.subr.bf16.mxu1 %v3064_v1 }
 0x53e   : > { %1894 = vmax.xlane.f32.xlu0 %v1893_v12  ;;  %v1811_v59 = vpop.xlane.xlu0 %1810 }
 0x53f   : > { %1903 = vmax.xlane.f32.xlu1 %v1902_v46  ;;  %v1971_v42 = vsub.f32 %v4536_v25, %v1811_v59  ;;  %v1972_v1 = vsub.f32 %v4538_v9, %v1811_v59  ;;  %v1881_v46 = vmax.f32 %v3990_v17, %v3993_v24  ;;  %v4542_v59 = vld [vmem:[#allocation39_spill] sm:$0xff] }
 0x542   : > { %2362 = vmatpush1.bf16.xpose.msra.mxu1 %v3066_v15  ;;  %1888 = vmax.xlane.f32.xlu0 %v1887_v11  ;;  %v1814_v0 = vpop.xlane.xlu1 %1813  ;;  %v1805_v45 = vpop.xlane.xlu0 %1804  ;;  %v1890_v11 = vmax.f32 %v4012_v16, %v4015_v19 }
 0x543   : > { %1897 = vmax.xlane.f32.xlu1 %v1896_v13  ;;  %2363 = vmatprep.subr.bf16.mxu1 %v3068_v62  ;;  %v1973_v43 = vsub.f32 %v4537_v3, %v1814_v0  ;;  %v1974_v12 = vsub.f32 %v4539_v10, %v1814_v0  ;;  %v4540_v13 = vld [vmem:[#allocation38_spill] sm:$0xff]  ;;  %v1968_v3 = vsub.f32 %v4541_v27, %v1805_v45  ;;  %v3070_v10 = vpop.eup %3069 }
 0x544   : > { %v1875_v0 = vmax.f32 %v3969_v47, %v3971_v29 }
 0x545   : > { %v2069_v14 = vpack.c.bf16 %v1973_v43, %v1971_v42  ;;  %v2070_v15 = vpack.c.bf16 %v1974_v12, %v1972_v1  ;;  %v4543_v42 = vld [vmem:[#allocation36_spill] sm:$0xff]  ;;  %v1884_v1 = vmax.f32 %v3997_v35, %v4000_v37 }
 0x546   : > { %1882 = vmax.xlane.f32.xlu0 %v1881_v46  ;;  %v1808_v44 = vpop.xlane.xlu1 %1807  ;;  %v1967_v43 = vsub.f32 %v4543_v42, %v1805_v45  ;;  %v1799_v17 = vpop.xlane.xlu0 %1798  ;;  %v1869_v45 = vmax.f32 %v3945_v48, %v3955_v57 }
 0x547   : > { %v2194_v25 = vmul.bf16 1069105081, %v2069_v14  ;;  %1891 = vmax.xlane.f32.xlu1 %v1890_v11  ;;  %v1969_v62 = vsub.f32 %v4540_v13, %v1808_v44  ;;  %v2197_v52 = vmul.bf16 1069105081, %v2070_v15  ;;  %v1970_v9 = vsub.f32 %v4542_v59, %v1808_v44  ;;  %v3072_v14 = vpop.eup %3071  ;;  %v4544_v11 = vld [vmem:[#allocation33_spill] sm:$0xff]  ;;  %v4545_v13 = vld [vmem:[#allocation35_spill] sm:$0xff] }
 0x548   : > { %v1964_v15 = vsub.f32 %v4544_v11, %v1799_v17  ;;  %v4548_v11 = vld [vmem:[#allocation32_spill] sm:$0xff] }
 0x549   : > { %3075 = vpow.bf16 %v2194_v25  ;;  %v2068_v12 = vpack.c.bf16 %v1970_v9, %v1968_v3  ;;  %v2067_v46 = vpack.c.bf16 %v1969_v62, %v1967_v43  ;;  %v1878_v25 = vmax.f32 %v3979_v58, %v3982_v28  ;;  %v4546_v62 = vld [vmem:[#allocation34_spill] sm:$0xff]  ;;  %v4547_v43 = vld [vmem:[#allocation31_spill] sm:$0xff] }
 0x54a   : > { %3077 = vpow.bf16 %v2197_v52  ;;  %2364 = vmatpush1.bf16.xpose.msra.mxu1 %v3070_v10  ;;  %1876 = vmax.xlane.f32.xlu0 %v1875_v0  ;;  %v1802_v27 = vpop.xlane.xlu1 %1801  ;;  %v1793_v0 = vpop.xlane.xlu0 %1792 }
 0x54b   : > { %1885 = vmax.xlane.f32.xlu1 %v1884_v1  ;;  %2365 = vmatprep.subr.bf16.mxu1 %v3072_v14  ;;  %v2191_v44 = vmul.bf16 1069105081, %v2068_v12  ;;  %v1966_v59 = vsub.f32 %v4545_v13, %v1802_v27  ;;  %v2188_v9 = vmul.bf16 1069105081, %v2067_v46  ;;  %v1965_v10 = vsub.f32 %v4546_v62, %v1802_v27  ;;  %v3074_v12 = vpop.eup %3073 }
 0x54c   : > { %v1863_v14 = vmax.f32 %v3929_v54, %v3931_v8  ;;  %v1963_v13 = vsub.f32 %v4548_v11, %v1799_v17  ;;  %v4550_v17 = vld [vmem:[#allocation30_spill] sm:$0xff] }
 0x54d   : > { %3079 = vpow.bf16 %v2191_v44  ;;  %v2066_v52 = vpack.c.bf16 %v1966_v59, %v1964_v15  ;;  %v1872_v44 = vmax.f32 %v3957_v31, %v3960_v20  ;;  %v4549_v15 = vld [vmem:[#allocation29_spill] sm:$0xff] }
 0x54e   : > { %1870 = vmax.xlane.f32.xlu0 %v1869_v45  ;;  %v1796_v3 = vpop.xlane.xlu1 %1795  ;;  %v1960_v59 = vsub.f32 %v4549_v15, %v1793_v0  ;;  %3081 = vpow.bf16 %v2188_v9  ;;  %v2065_v46 = vpack.c.bf16 %v1965_v10, %v1963_v13  ;;  %v4551_v15 = vld [vmem:[#allocation27_spill] sm:$0xff]  ;;  %v4553_v10 = vld [vmem:[#allocation25_spill] sm:$0xff] }
 0x54f   : > { %1879 = vmax.xlane.f32.xlu1 %v1878_v25  ;;  %v2185_v42 = vmul.bf16 1069105081, %v2066_v52  ;;  %v1962_v1 = vsub.f32 %v4547_v43, %v1796_v3  ;;  %v1866_v25 = vmax.f32 %v3937_v18, %v3939_v36  ;;  %v1787_v43 = vpop.xlane.xlu0 %1786  ;;  %v1961_v11 = vsub.f32 %v4550_v17, %v1796_v3  ;;  %v4555_v18 = vld [vmem:[#allocation23_spill] sm:$0xff]  ;;  %v4561_v36 = vld [vmem:[#allocation17_spill] sm:$0xff] }
 0x550   : > { %v2182_v62 = vmul.bf16 1069105081, %v2065_v46 }
 0x551   : > { %3083 = vpow.bf16 %v2185_v42  ;;  %v2064_v27 = vpack.c.bf16 %v1962_v1, %v1960_v59  ;;  %v1956_v42 = vsub.f32 %v4553_v10, %v1787_v43  ;;  %v4557_v10 = vld [vmem:[#allocation21_spill] sm:$0xff] }
 0x552   : > { %2366 = vmatpush1.bf16.xpose.msra.mxu1 %v3074_v12  ;;  %1864 = vmax.xlane.f32.xlu0 %v1863_v14  ;;  %v1790_v45 = vpop.xlane.xlu1 %1789  ;;  %v4552_v14 = vld [vmem:[#allocation28_spill] sm:$0xff]  ;;  %3085 = vpow.bf16 %v2182_v62 }
 0x553   : > { %1873 = vmax.xlane.f32.xlu1 %v1872_v44  ;;  %v2179_v8 = vmul.bf16 1069105081, %v2064_v27  ;;  %v1958_v12 = vsub.f32 %v4551_v15, %v1790_v45  ;;  %v1959_v9 = vsub.f32 %v4552_v14, %v1793_v0  ;;  %v1781_v3 = vpop.xlane.xlu0 %1780  ;;  %v4556_v0 = vld [vmem:[#allocation24_spill] sm:$0xff] }
 0x555   : > { %v2063_v1 = vpack.c.bf16 %v1961_v11, %v1959_v9  ;;  %3087 = vpow.bf16 %v2179_v8  ;;  %v2062_v44 = vpack.c.bf16 %v1958_v12, %v1956_v42  ;;  %v4558_v42 = vld [vmem:[#allocation22_spill] sm:$0xff] }
 0x556   : > { %v1784_v59 = vpop.xlane.xlu1 %1783 }
 0x557   : > { %v3076_v52 = vpop.eup %3075  ;;  %1867 = vmax.xlane.f32.xlu1 %v1866_v25  ;;  %v2176_v46 = vmul.bf16 1069105081, %v2063_v1  ;;  %v4554_v25 = vld [vmem:[#allocation26_spill] sm:$0xff]  ;;  %v2173_v27 = vmul.bf16 1069105081, %v2062_v44  ;;  %v1954_v15 = vsub.f32 %v4555_v18, %v1784_v59  ;;  %v1775_v9 = vpop.xlane.xlu0 %1774 }
 0x558   : > { %v3078_v54 = vpop.eup %3077  ;;  %v1957_v17 = vsub.f32 %v4554_v25, %v1790_v45  ;;  %v1953_v45 = vsub.f32 %v4558_v42, %v1784_v59  ;;  %v4560_v25 = vld [vmem:[#allocation20_spill] sm:$0xff] }
 0x559   : > { %2367 = vmatprep.subr.bf16.mxu1 %v3078_v54  ;;  %v1955_v54 = vsub.f32 %v4556_v0, %v1787_v43  ;;  %3089 = vpow.bf16 %v2176_v46  ;;  %v1951_v43 = vsub.f32 %v4560_v25, %v1781_v3  ;;  %v4564_v42 = vld [vmem:[#allocation16_spill] sm:$0xff]  ;;  %v4565_v25 = vld [vmem:[#allocation13_spill] sm:$0xff] }
 0x55a   : > { %2368 = vmatpush2.bf16.xpose.msra.mxu1 %v3076_v52  ;;  %v1952_v52 = vsub.f32 %v4557_v10, %v1781_v3  ;;  %3091 = vpow.bf16 %v2173_v27  ;;  %v1778_v11 = vpop.xlane.xlu1 %1777  ;;  %v1948_v10 = vsub.f32 %v4561_v36, %v1775_v9  ;;  %v1947_v3 = vsub.f32 %v4564_v42, %v1775_v9 }
 0x55b   : > { %v3080_v13 = vpop.eup %3079  ;;  %v2061_v62 = vpack.c.bf16 %v1957_v17, %v1955_v54  ;;  %v4562_v54 = vld [vmem:[#allocation18_spill] sm:$0xff] }
 0x55c   : > { %2369 = vmatprep.subr.bf16.mxu1 %v3080_v13  ;;  %v3082_v48 = vpop.eup %3081  ;;  %v2060_v8 = vpack.c.bf16 %v1954_v15, %v1952_v52  ;;  %v4559_v13 = vld [vmem:[#allocation19_spill] sm:$0xff]  ;;  %v1769_v15 = vpop.xlane.xlu0 %1768  ;;  %v1949_v59 = vsub.f32 %v4562_v54, %v1778_v11 }
 0x55d   : > { %v2170_v12 = vmul.bf16 1069105081, %v2061_v62  ;;  %v1950_v18 = vsub.f32 %v4559_v13, %v1778_v11  ;;  %v4563_v52 = vld [vmem:[#allocation15_spill] sm:$0xff]  ;;  %v1944_v36 = vsub.f32 %v4565_v25, %v1769_v15 }
 0x55e   : > { %v2167_v1 = vmul.bf16 1069105081, %v2060_v8  ;;  %v1772_v17 = vpop.xlane.xlu1 %1771 }
 0x55f   : > { %v3084_v14 = vpop.eup %3083  ;;  %3093 = vpow.bf16 %v2170_v12  ;;  %v2058_v46 = vpack.c.bf16 %v1950_v18, %v1948_v10  ;;  %v1946_v62 = vsub.f32 %v4563_v52, %v1772_v17  ;;  %v2057_v12 = vpack.c.bf16 %v1949_v59, %v1947_v3  ;;  %v4570_v3 = vld [vmem:[#allocation60_spill] sm:$0xff] }
 0x560   : > { %v3086_v44 = vpop.eup %3085  ;;  %3095 = vpow.bf16 %v2167_v1  ;;  %v4566_v1 = vld [vmem:[#allocation14_spill] sm:$0xff] }
 0x561   : > { %v1945_v18 = vsub.f32 %v4566_v1, %v1772_v17  ;;  %v4568_v17 = vld [vmem:[#allocation58_spill] sm:$0xff] }
 0x562   : > { %2370 = vmatpush2.bf16.xpose.msra.mxu1 %v3082_v48  ;;  %v2059_v48 = vpack.c.bf16 %v1953_v45, %v1951_v43  ;;  %v2056_v45 = vpack.c.bf16 %v1946_v62, %v1944_v36  ;;  %v4567_v43 = vld [vmem:[#allocation12_spill] sm:$0xff] }
 0x563   : > { %2371 = vmatprep.subr.bf16.mxu1 %v3084_v14  ;;  %v3088_v0 = vpop.eup %3087  ;;  %v2161_v14 = vmul.bf16 1069105081, %v2058_v46  ;;  %v1943_v11 = vsub.f32 %v4567_v43, %v1769_v15 }
 0x564   : > { %v2164_v27 = vmul.bf16 1069105081, %v2059_v48 }
 0x565   : > { %v2055_v46 = vpack.c.bf16 %v1945_v18, %v1943_v11  ;;  %v4571_v18 = vld [vmem:[#allocation55_spill] sm:$0xff]  ;;  %v4572_v11 = vld [vmem:[#allocation56_spill] sm:$0xff] }
 0x566   : > { %3097 = vpow.bf16 %v2164_v27 }
 0x567   : > { %v3090_v8 = vpop.eup %3089  ;;  %3099 = vpow.bf16 %v2161_v14  ;;  %v2152_v9 = vmul.bf16 1069105081, %v2055_v46 }
 0x568   : > { %v3092_v13 = vpop.eup %3091 }
 0x56a   : > { %2372 = vmatpush2.bf16.xpose.msra.mxu1 %v3086_v44  ;;  %v2158_v44 = vmul.bf16 1069105081, %v2057_v12 }
 0x56b   : > { %2373 = vmatprep.subr.bf16.mxu1 %v3088_v0  ;;  %v2155_v0 = vmul.bf16 1069105081, %v2056_v45 }
 0x56c   : > { %3101 = vpow.bf16 %v2158_v44 }
 0x56d   : > { %v3094_v10 = vpop.eup %3093  ;;  %3103 = vpow.bf16 %v2155_v0 }
 0x56e   : > { %v3096_v48 = vpop.eup %3095  ;;  %3105 = vpow.bf16 %v2152_v9  ;;  %v4574_v9 = vld [vmem:[#allocation54_spill] sm:$0xff] }
 0x572   : > { %2374 = vmatpush2.bf16.xpose.msra.mxu1 %v3090_v8  ;;  %v4569_v8 = vld [vmem:[#allocation59_spill] sm:$0xff] }
 0x573   : > { %2375 = vmatprep.subr.bf16.mxu1 %v3092_v13 }
 0x574   : > { %v3098_v27 = vpop.eup %3097 }
 0x575   : > { %v3100_v59 = vpop.eup %3099 }
 0x57a   : > { %2376 = vmatpush2.bf16.xpose.msra.mxu1 %v3094_v10  ;;  %v4573_v10 = vld [vmem:[#allocation57_spill] sm:$0xff]  ;;  %v3102_v46 = vpop.eup %3101 }
 0x57b   : > { %2377 = vmatprep.subr.bf16.mxu1 %v3096_v48 }
 0x57e   : > { %v1859_v54 = vpop.xlane.xlu0 %1858 }
 0x57f   : > { %v2003_v62 = vsub.f32 %v4568_v17, %v1859_v54  ;;  %v2004_v15 = vsub.f32 %v4569_v8, %v1859_v54  ;;  %v4576_v8 = vld [vmem:[#allocation53_spill] sm:$0xff] }
 0x582   : > { %2378 = vmatpush2.bf16.xpose.msra.mxu1 %v3098_v27  ;;  %v1853_v14 = vpop.xlane.xlu0 %1852  ;;  %v1862_v52 = vpop.xlane.xlu1 %1861 }
 0x583   : > { %2379 = vmatprep.subr.bf16.mxu1 %v3100_v59  ;;  %v2005_v42 = vsub.f32 %v3921_v34, %v1862_v52  ;;  %v2006_v13 = vsub.f32 %v4570_v3, %v1862_v52  ;;  %v2000_v44 = vsub.f32 %v4571_v18, %v1853_v14  ;;  %v1999_v54 = vsub.f32 %v4574_v9, %v1853_v14  ;;  %v3104_v27 = vpop.eup %3103  ;;  %v4575_v52 = vld [vmem:[#allocation51_spill] sm:$0xff] }
 0x585   : > { %v2085_v25 = vpack.c.bf16 %v2005_v42, %v2003_v62  ;;  %v2086_v36 = vpack.c.bf16 %v2006_v13, %v2004_v15 }
 0x586   : > { %v1856_v12 = vpop.xlane.xlu1 %1855  ;;  %v1847_v43 = vpop.xlane.xlu0 %1846 }
 0x587   : > { %v2242_v45 = vmul.bf16 1069105081, %v2085_v25  ;;  %v2245_v1 = vmul.bf16 1069105081, %v2086_v36  ;;  %v2001_v0 = vsub.f32 %v4572_v11, %v1856_v12  ;;  %v2002_v48 = vsub.f32 %v4573_v10, %v1856_v12  ;;  %v4577_v12 = vld [vmem:[#allocation52_spill] sm:$0xff] }
 0x588   : > { %v1996_v17 = vsub.f32 %v4575_v52, %v1847_v43  ;;  %v4579_v10 = vld [vmem:[#allocation48_spill] sm:$0xff] }
 0x589   : > { %3107 = vpow.bf16 %v2242_v45  ;;  %v2084_v34 = vpack.c.bf16 %v2002_v48, %v2000_v44  ;;  %v2083_v62 = vpack.c.bf16 %v2001_v0, %v1999_v54  ;;  %v3106_v45 = vpop.eup %3105  ;;  %v4578_v44 = vld [vmem:[#allocation50_spill] sm:$0xff] }
 0x58a   : > { %3109 = vpow.bf16 %v2245_v1  ;;  %2380 = vmatpush2.bf16.xpose.msra.mxu1 %v3102_v46  ;;  %v1850_v59 = vpop.xlane.xlu1 %1849  ;;  %v1841_v36 = vpop.xlane.xlu0 %1840  ;;  %v1995_v11 = vsub.f32 %v4578_v44, %v1847_v43  ;;  %v4132_v54 = vld [vmem:[#allocation3 + $0x30] ss:$-48 sps:$4 sm:$0xff]  }
 0x58b   : > { %2381 = vmatprep.subr.bf16.mxu1 %v3104_v27  ;;  %v1998_v15 = vsub.f32 %v4576_v8, %v1850_v59  ;;  %v2239_v42 = vmul.bf16 1069105081, %v2084_v34  ;;  %v2236_v25 = vmul.bf16 1069105081, %v2083_v62  ;;  %v1997_v14 = vsub.f32 %v4577_v12, %v1850_v59  ;;  %v4134_v27 = vld [vmem:[#allocation3 + $0x1c] ss:$-8 sps:$4 sm:$0xff]  }
 0x58c   : > { %v1992_v48 = vsub.f32 %v4579_v10, %v1841_v36 }
 0x58d   : > { %v2082_v3 = vpack.c.bf16 %v1998_v15, %v1996_v17  ;;  %3111 = vpow.bf16 %v2239_v42  ;;  %v2081_v0 = vpack.c.bf16 %v1997_v14, %v1995_v11  ;;  %v4580_v17 = vld [vmem:[#allocation49_spill] sm:$0xff]  ;;  %v4581_v15 = vld [vmem:[#allocation47_spill] sm:$0xff] }
 0x58e   : > { %v1844_v13 = vpop.xlane.xlu1 %1843  ;;  %3113 = vpow.bf16 %v2236_v25  ;;  %v1835_v52 = vpop.xlane.xlu0 %1834  ;;  %v1991_v42 = vsub.f32 %v4581_v15, %v1841_v36 }
 0x58f   : > { %v2233_v18 = vmul.bf16 1069105081, %v2082_v3  ;;  %v1994_v1 = vsub.f32 %v3897_v39, %v1844_v13  ;;  %v2230_v59 = vmul.bf16 1069105081, %v2081_v0  ;;  %v1993_v62 = vsub.f32 %v4580_v17, %v1844_v13  ;;  %v4582_v3 = vld [vmem:[#allocation46_spill] sm:$0xff]  ;;  %v4583_v0 = vld [vmem:[#allocation45_spill] sm:$0xff] }
 0x590   : > { %v1988_v25 = vsub.f32 %v4582_v3, %v1835_v52 }
 0x591   : > { %3115 = vpow.bf16 %v2233_v18  ;;  %v2080_v46 = vpack.c.bf16 %v1994_v1, %v1992_v48  ;;  %v2079_v12 = vpack.c.bf16 %v1993_v62, %v1991_v42  ;;  %v4142_v18 = vld [vmem:[#allocation3 + $0x18] ss:$-8 sps:$4 sm:$0xff]  }
 0x592   : > { %2382 = vmatpush2.bf16.xpose.msra.mxu1 %v3106_v45  ;;  %v1838_v9 = vpop.xlane.xlu1 %1837  ;;  %3117 = vpow.bf16 %v2230_v59  ;;  %v1829_v1 = vpop.xlane.xlu0 %1828 }
 0x593   : > { %v2227_v8 = vmul.bf16 1069105081, %v2080_v46  ;;  %v1990_v43 = vsub.f32 %v3889_v4, %v1838_v9  ;;  %v4144_v4 = vld [vmem:[#allocation3 + $0x24] ss:$8 sps:$4 sm:$0xff]   ;;  %v2224_v36 = vmul.bf16 1069105081, %v2079_v12  ;;  %v1989_v44 = vsub.f32 %v3887_v51, %v1838_v9 }
 0x594   : > { %v1987_v46 = vsub.f32 %v4583_v0, %v1835_v52  ;;  %v1984_v59 = vsub.f32 %v3867_v63, %v1829_v1  ;;  %v4152_v9 = vld [vmem:[#allocation3 + $0x20] ss:$8 sps:$4 sm:$0xff]   ;;  %v1983_v42 = vsub.f32 %v3865_v49, %v1829_v1 }
 0x595   : > { %3119 = vpow.bf16 %v2227_v8  ;;  %v2078_v14 = vpack.c.bf16 %v1990_v43, %v1988_v25 }
 0x596   : > { %v1832_v13 = vpop.xlane.xlu1 %1831  ;;  %3121 = vpow.bf16 %v2224_v36  ;;  %v2077_v17 = vpack.c.bf16 %v1989_v44, %v1987_v46  ;;  %v1823_v52 = vpop.xlane.xlu0 %1822 }
 0x597   : > { %v3108_v34 = vpop.eup %3107  ;;  %v2221_v11 = vmul.bf16 1069105081, %v2078_v14  ;;  %v1986_v10 = vsub.f32 %v3875_v60, %v1832_v13  ;;  %v4154_v60 = vld [vmem:[#allocation3 + $0x44] ss:$-8 sps:$4 sm:$0xff]   ;;  %v1985_v8 = vsub.f32 %v3873_v55, %v1832_v13  ;;  %v1980_v25 = vsub.f32 %v3851_v30, %v1823_v52  ;;  %v2303_v14 = vld [vmem:[#allocation3 + $0x8] sm:$0xff] }
 0x598   : > { %v3110_v39 = vpop.eup %3109  ;;  %v4162_v13 = vld [vmem:[#allocation3 + $0x40] ss:$-8 sps:$4 sm:$0xff]  }
 0x599   : > { %2384 = vmatmul.mubr.bf16.vlgmr.msra.gmra.mxu1 %v4132_v54  ;;  %2432 = vmatprep.subr.bf16.mxu1 %v3110_v39  ;;  %3123 = vpow.bf16 %v2221_v11  ;;  %v2076_v62 = vpack.c.bf16 %v1986_v10, %v1984_v59  ;;  %v2218_v39 = vmul.bf16 1069105081, %v2077_v17  ;;  %v2075_v12 = vpack.c.bf16 %v1985_v8, %v1983_v42 }
 0x59a   : > { %2433 = vmatpush1.bf16.xpose.msra.mxu1 %v3108_v34  ;;  %2393 = vmatprep.mubr.bf16.mxu1 %v4134_v27  ;;  %v1826_v51 = vpop.xlane.xlu1 %1825  ;;  %v1817_v36 = vpop.xlane.xlu0 %1816  ;;  %v1979_v10 = vsub.f32 %v3849_v50, %v1823_v52 }
 0x59b   : > { %v3112_v45 = vpop.eup %3111  ;;  %v2215_v43 = vmul.bf16 1069105081, %v2076_v62  ;;  %v1982_v63 = vsub.f32 %v3859_v22, %v1826_v51  ;;  %3125 = vpow.bf16 %v2218_v39  ;;  %v4164_v22 = vcombine.high %v2303_v14, %v2303_v14  ;;  %v4584_v62 = vld [vmem:[#allocation44_spill] sm:$0xff]  ;;  %v4585_v39 = vld [vmem:[#allocation67_spill] sm:$0xff] }
 0x59c   : > { %2434 = vmatprep.subr.bf16.mxu1 %v3112_v45  ;;  %v3114_v48 = vpop.eup %3113  ;;  %v2212_v49 = vmul.bf16 1069105081, %v2075_v12  ;;  %v1981_v1 = vsub.f32 %v3857_v41, %v1826_v51  ;;  %v1976_v0 = vsub.f32 %v3835_v56, %v1817_v36  ;;  %v4172_v41 = vcombine.low %v2303_v14, %v2303_v14 }
 0x59d   : > { %3127 = vpow.bf16 %v2215_v43  ;;  %v2074_v55 = vpack.c.bf16 %v1982_v63, %v1980_v25  ;;  %v1975_v51 = vsub.f32 %v4584_v62, %v1817_v36 }
 0x59e   : > { %v1820_v45 = vpop.xlane.xlu1 %1819  ;;  %3129 = vpow.bf16 %v2212_v49  ;;  %v2073_v46 = vpack.c.bf16 %v1981_v1, %v1979_v10 }
 0x59f   : > { %v3116_v34 = vpop.eup %3115  ;;  %v2209_v44 = vmul.bf16 1069105081, %v2074_v55  ;;  %v1978_v30 = vsub.f32 %v3843_v38, %v1820_v45  ;;  %v1977_v38 = vsub.f32 %v3841_v53, %v1820_v45 }
 0x5a0   : > { %v3118_v15 = vpop.eup %3117  ;;  %v2206_v59 = vmul.bf16 1069105081, %v2073_v46 }
 0x5a1   : > { %2394 = vmatmul.mubr.bf16.gmra.mxu1 %v4142_v18  ;;  %3131 = vpow.bf16 %v2209_v44  ;;  %v2071_v52 = vpack.c.bf16 %v1977_v38, %v1975_v51  ;;  %v4586_v51 = vld [vmem:[#allocation70_spill] sm:$0xff] }
 0x5a2   : > { %2435 = vmatpush1.bf16.xpose.msra.mxu1 %v3114_v48  ;;  %2403 = vmatprep.mubr.bf16.mxu1 %v4144_v4  ;;  %3133 = vpow.bf16 %v2206_v59 }
 0x5a3   : > { %2436 = vmatprep.subr.bf16.mxu1 %v3116_v34  ;;  %v3120_v3 = vpop.eup %3119  ;;  %v2072_v34 = vpack.c.bf16 %v1978_v30, %v1976_v0  ;;  %v2200_v8 = vmul.bf16 1069105081, %v2071_v52 }
 0x5a4   : > { %v3122_v11 = vpop.eup %3121 }
 0x5a5   : > { %v2203_v17 = vmul.bf16 1069105081, %v2072_v34 }
 0x5a7   : > { %v3124_v48 = vpop.eup %3123  ;;  %3135 = vpow.bf16 %v2203_v17 }
 0x5a8   : > { %3137 = vpow.bf16 %v2200_v8 }
 0x5a9   : > { %2404 = vmatmul.mubr.bf16.gmra.mxu1 %v4152_v9  ;;  %v3126_v50 = vpop.eup %3125 }
 0x5aa   : > { %2437 = vmatpush1.bf16.xpose.msra.mxu1 %v3118_v15  ;;  %2413 = vmatprep.mubr.bf16.mxu1 %v4154_v60 }
 0x5ab   : > { %2438 = vmatprep.subr.bf16.mxu1 %v3120_v3  ;;  %v3128_v56 = vpop.eup %3127 }
 0x5ac   : > { %v3130_v63 = vpop.eup %3129 }
 0x5af   : > { %v3132_v15 = vpop.eup %3131 }
 0x5b0   : > { %v3134_v1 = vpop.eup %3133 }
 0x5b1   : > { %2414 = vmatmul.mubr.bf16.gmra.mxu1 %v4162_v13 }
 0x5b2   : > { %2439 = vmatpush1.bf16.xpose.msra.mxu1 %v3122_v11  ;;  %2423 = vmatprep.mubr.bf16.mxu1 %v4164_v22 }
 0x5b3   : > { %2440 = vmatprep.subr.bf16.mxu1 %v3124_v48 }
 0x5b5   : > { %v3136_v48 = vpop.eup %3135 }
 0x5b9   : > { %2424 = vmatmul.mubr.bf16.gmra.mxu1 %v4172_v41 }
 0x5ba   : > { %2441 = vmatpush1.bf16.xpose.msra.mxu1 %v3126_v50  ;;  %2464 = vmatprep.mubr.bf16.mxu1 %v4585_v39  ;;  %v4587_v39 = vld [vmem:[#allocation69_spill] sm:$0xff] }
 0x5bb   : > { %2442 = vmatprep.subr.bf16.mxu1 %v3128_v56 }
 0x5bf   : > { %v1907_v43 = vpop.xlane.xlu0 %1906 }
 0x5c0   : > { %v2035_v3 = vsub.f32 %v4043_v5, %v1907_v43  ;;  %v2036_v25 = vsub.f32 %v4046_v2, %v1907_v43 }
 0x5c2   : > { %2443 = vmatpush1.bf16.xpose.msra.mxu1 %v3130_v63 }
 0x5c3   : > { %2444 = vmatprep.subr.bf16.mxu1 %v3132_v15  ;;  %v1901_v53 = vpop.xlane.xlu0 %1900 }
 0x5c4   : > { %v1910_v42 = vpop.xlane.xlu1 %1909  ;;  %v2032_v49 = vsub.f32 %v4034_v23, %v1901_v53  ;;  %v2031_v2 = vsub.f32 %v4031_v21, %v1901_v53 }
 0x5c5   : > { %v2037_v12 = vsub.f32 %v4050_v7, %v1910_v42  ;;  %v2038_v14 = vsub.f32 %v4053_v61, %v1910_v42 }
 0x5c7   : > { %v2101_v55 = vpack.c.bf16 %v2037_v12, %v2035_v3  ;;  %v2102_v45 = vpack.c.bf16 %v2038_v14, %v2036_v25  ;;  %v1895_v5 = vpop.xlane.xlu0 %1894 }
 0x5c8   : > { %v1904_v36 = vpop.xlane.xlu1 %1903  ;;  %v2028_v23 = vsub.f32 %v4022_v32, %v1895_v5  ;;  %v2027_v56 = vsub.f32 %v4586_v51, %v1895_v5 }
 0x5c9   : > { %v2290_v44 = vmul.bf16 1069105081, %v2101_v55  ;;  %v2293_v30 = vmul.bf16 1069105081, %v2102_v45  ;;  %v2033_v11 = vsub.f32 %v4036_v26, %v1904_v36  ;;  %v2034_v10 = vsub.f32 %v4039_v6, %v1904_v36  ;;  %v3138_v6 = vpop.eup %3137 }
 0x5ca   : > { %2445 = vmatpush1.bf16.xpose.msra.mxu1 %v3134_v1 }
 0x5cb   : > { %3139 = vpow.bf16 %v2290_v44  ;;  %v2100_v7 = vpack.c.bf16 %v2034_v10, %v2032_v49  ;;  %2446 = vmatprep.subr.bf16.mxu1 %v3136_v48  ;;  %v2099_v0 = vpack.c.bf16 %v2033_v11, %v2031_v2  ;;  %v1889_v17 = vpop.xlane.xlu0 %1888  ;;  %v4589_v11 = vld [vmem:[#allocation66_spill] sm:$0xff] }
 0x5cc   : > { %3141 = vpow.bf16 %v2293_v30  ;;  %v1898_v61 = vpop.xlane.xlu1 %1897  ;;  %v2024_v32 = vsub.f32 %v4587_v39, %v1889_v17 }
 0x5cd   : > { %v2287_v46 = vmul.bf16 1069105081, %v2100_v7  ;;  %v2030_v34 = vsub.f32 %v4027_v33, %v1898_v61  ;;  %v2284_v38 = vmul.bf16 1069105081, %v2099_v0  ;;  %v2029_v50 = vsub.f32 %v4024_v40, %v1898_v61 }
 0x5cf   : > { %v2098_v59 = vpack.c.bf16 %v2030_v34, %v2028_v23  ;;  %3143 = vpow.bf16 %v2287_v46  ;;  %v2097_v52 = vpack.c.bf16 %v2029_v50, %v2027_v56  ;;  %v1883_v15 = vpop.xlane.xlu0 %1882  ;;  %v4591_v56 = vld [vmem:[#allocation65_spill] sm:$0xff] }
 0x5d0   : > { %v1892_v26 = vpop.xlane.xlu1 %1891  ;;  %3145 = vpow.bf16 %v2284_v38  ;;  %v2020_v12 = vsub.f32 %v3993_v24, %v1883_v15  ;;  %v2019_v10 = vsub.f32 %v4589_v11, %v1883_v15 }
 0x5d1   : > { %v2281_v21 = vmul.bf16 1069105081, %v2098_v59  ;;  %v2026_v62 = vsub.f32 %v4015_v19, %v1892_v26  ;;  %v2278_v63 = vmul.bf16 1069105081, %v2097_v52  ;;  %v2025_v53 = vsub.f32 %v4012_v16, %v1892_v26  ;;  %v4588_v19 = vld [vmem:[#allocation68_spill] sm:$0xff] }
 0x5d2   : > { %2447 = vmatpush1.bf16.xpose.msra.mxu1 %v3138_v6  ;;  %v2023_v25 = vsub.f32 %v4588_v19, %v1889_v17 }
 0x5d3   : > { %3147 = vpow.bf16 %v2281_v21  ;;  %v2096_v33 = vpack.c.bf16 %v2026_v62, %v2024_v32  ;;  %v1877_v1 = vpop.xlane.xlu0 %1876  ;;  %v4590_v62 = vld [vmem:[#allocation64_spill] sm:$0xff]  ;;  %v4592_v32 = vld [vmem:[#allocation62_spill] sm:$0xff] }
 0x5d4   : > { %v1886_v8 = vpop.xlane.xlu1 %1885  ;;  %3149 = vpow.bf16 %v2278_v63  ;;  %v2095_v14 = vpack.c.bf16 %v2025_v53, %v2023_v25  ;;  %v2016_v24 = vsub.f32 %v3971_v29, %v1877_v1  ;;  %v2015_v34 = vsub.f32 %v3969_v47, %v1877_v1  ;;  %v4594_v53 = vld [vmem:[#allocation61_spill] sm:$0xff] }
 0x5d5   : > { %v2275_v40 = vmul.bf16 1069105081, %v2096_v33  ;;  %v2022_v3 = vsub.f32 %v4000_v37, %v1886_v8  ;;  %v2021_v16 = vsub.f32 %v3997_v35, %v1886_v8 }
 0x5d6   : > { %v2272_v36 = vmul.bf16 1069105081, %v2095_v14 }
 0x5d7   : > { %3151 = vpow.bf16 %v2275_v40  ;;  %v2094_v45 = vpack.c.bf16 %v2022_v3, %v2020_v12  ;;  %v2093_v5 = vpack.c.bf16 %v2021_v16, %v2019_v10  ;;  %v1871_v23 = vpop.xlane.xlu0 %1870 }
 0x5d8   : > { %v1880_v49 = vpop.xlane.xlu1 %1879  ;;  %3153 = vpow.bf16 %v2272_v36  ;;  %v2012_v29 = vsub.f32 %v3955_v57, %v1871_v23  ;;  %v2011_v47 = vsub.f32 %v4591_v56, %v1871_v23 }
 0x5d9   : > { %v3140_v43 = vpop.eup %3139  ;;  %v2269_v44 = vmul.bf16 1069105081, %v2094_v45  ;;  %v2018_v37 = vsub.f32 %v3982_v28, %v1880_v49  ;;  %v2266_v61 = vmul.bf16 1069105081, %v2093_v5  ;;  %v2017_v35 = vsub.f32 %v3979_v58, %v1880_v49 }
 0x5da   : > { %v3142_v42 = vpop.eup %3141 }
 0x5db   : > { %2448 = vmatprep.subr.bf16.mxu1 %v3142_v42  ;;  %3155 = vpow.bf16 %v2269_v44  ;;  %v2092_v2 = vpack.c.bf16 %v2018_v37, %v2016_v24  ;;  %v2091_v26 = vpack.c.bf16 %v2017_v35, %v2015_v34  ;;  %v1865_v50 = vpop.xlane.xlu0 %1864  ;;  %v2523_v24 = vlaneseq }
 0x5dc   : > { %2449 = vmatpush2.bf16.xpose.msra.mxu1 %v3140_v43  ;;  %v1874_v7 = vpop.xlane.xlu1 %1873  ;;  %3157 = vpow.bf16 %v2266_v61  ;;  %v2008_v57 = vsub.f32 %v4592_v32, %v1865_v50  ;;  %v4593_v43 = vld [vmem:[#allocation63_spill] sm:$0xff]  ;;  %v2007_v42 = vsub.f32 %v4594_v53, %v1865_v50 }
 0x5dd   : > { %v3144_v55 = vpop.eup %3143  ;;  %v2263_v0 = vmul.bf16 1069105081, %v2092_v2  ;;  %v2014_v28 = vsub.f32 %v3960_v20, %v1874_v7  ;;  %v2260_v17 = vmul.bf16 1069105081, %v2091_v26  ;;  %v2013_v58 = vsub.f32 %v3957_v31, %v1874_v7  ;;  %v3183_v32 = vld [vmem:[%s3451_s17 + $0x80] sm:$0xff] }
 0x5de   : > { %2450 = vmatprep.subr.bf16.mxu1 %v3144_v55  ;;  %v3146_v30 = vpop.eup %3145  ;;  %v2524_v2 = vshrl.u32 %v2523_v24, 7  ;;  %v4223_v7 = vstv %s2517_s21 }
 0x5df   : > { %3159 = vpow.bf16 %v2263_v0  ;;  %v2090_v6 = vpack.c.bf16 %v2014_v28, %v2012_v29  ;;  %v2089_v52 = vpack.c.bf16 %v2013_v58, %v2011_v47  ;;  %v3179_v58 = vld [vmem:[%s3451_s17] sm:$0xff] }
 0x5e0   : > { %v1868_v38 = vpop.xlane.xlu1 %1867  ;;  %3161 = vpow.bf16 %v2260_v17  ;;  %v4225_v61 = vsub.s32 0, %v2524_v2  ;;  %v3182_v47 = vld [vmem:[%s3451_s17 + $0x60] sm:$0xff] }
 0x5e1   : > { %v3148_v48 = vpop.eup %3147  ;;  %v2257_v21 = vmul.bf16 1069105081, %v2090_v6  ;;  %v2010_v20 = vsub.f32 %v4590_v62, %v1868_v38  ;;  %v2254_v8 = vmul.bf16 1069105081, %v2089_v52  ;;  %v2009_v63 = vsub.f32 %v4593_v43, %v1868_v38  ;;  %v3180_v62 = vld [vmem:[%s3451_s17 + $0x20] sm:$0xff] }
 0x5e2   : > { %v3150_v46 = vpop.eup %3149  ;;  %v3184_v52 = vld [vmem:[%s3451_s17 + $0xa0] sm:$0xff] }
 0x5e3   : > { %3163 = vpow.bf16 %v2257_v21  ;;  %v2088_v33 = vpack.c.bf16 %v2010_v20, %v2008_v57  ;;  %v2087_v3 = vpack.c.bf16 %v2009_v63, %v2007_v42  ;;  %v3186_v63 = vld [vmem:[%s3451_s17 + $0xe0] sm:$0xff] }
 0x5e4   : > { %2451 = vmatpush2.bf16.xpose.msra.mxu1 %v3146_v30  ;;  %3165 = vpow.bf16 %v2254_v8  ;;  %v3185_v8 = vld [vmem:[%s3451_s17 + $0xc0] sm:$0xff] }
 0x5e5   : > { %2452 = vmatprep.subr.bf16.mxu1 %v3148_v48  ;;  %v3152_v59 = vpop.eup %3151  ;;  %v2251_v15 = vmul.bf16 1069105081, %v2088_v33  ;;  %v2248_v19 = vmul.bf16 1069105081, %v2087_v3 }
 0x5e6   : > { %v3154_v51 = vpop.eup %3153 }
 0x5e7   : > { %3167 = vpow.bf16 %v2251_v15 }
 0x5e8   : > { %3169 = vpow.bf16 %v2248_v19 }
 0x5e9   : > { %v3156_v39 = vpop.eup %3155 }
 0x5ea   : > { %v3158_v31 = vpop.eup %3157 }
 0x5ec   : > { %2453 = vmatpush2.bf16.xpose.msra.mxu1 %v3150_v46 }
 0x5ed   : > { %2454 = vmatprep.subr.bf16.mxu1 %v3152_v59  ;;  %v3160_v40 = vpop.eup %3159 }
 0x5ee   : > { %v3162_v25 = vpop.eup %3161 }
 0x5f1   : > { %v3164_v12 = vpop.eup %3163 }
 0x5f2   : > { %v3166_v14 = vpop.eup %3165 }
 0x5f4   : > { %2455 = vmatpush2.bf16.xpose.msra.mxu1 %v3154_v51  ;;  %v3181_v51 = vld [vmem:[%s3451_s17 + $0x40] sm:$0xff] }
 0x5f5   : > { %2456 = vmatprep.subr.bf16.mxu1 %v3156_v39  ;;  %v3168_v55 = vpop.eup %3167 }
 0x5f6   : > { %v3170_v45 = vpop.eup %3169 }
 0x5fc   : > { %2457 = vmatpush2.bf16.xpose.msra.mxu1 %v3158_v31 }
 0x5fd   : > { %2458 = vmatprep.subr.bf16.mxu1 %v3160_v40 }
 0x604   : > { %2459 = vmatpush2.bf16.xpose.msra.mxu1 %v3162_v25 }
 0x605   : > { %2460 = vmatprep.subr.bf16.mxu1 %v3164_v12 }
 0x60c   : > { %2461 = vmatpush2.bf16.xpose.msra.mxu1 %v3166_v14 }
 0x60d   : > { %2462 = vmatprep.subr.bf16.mxu1 %v3168_v55  ;;  %v3187_v55 = vld [vmem:[%s3451_s17 + $0x8] sm:$0xff] }
 0x614   : > { %2463 = vmatpush2.bf16.xpose.msra.mxu1 %v3170_v45 }
 0x61b   : > { %2465 = vmatmul.mubr.bf16.vlgmr.msra.gmra.mxu1 %v4132_v54 }
 0x61c   : > { %2474 = vmatprep.mubr.bf16.mxu1 %v4134_v27 }
 0x623   : > { %2475 = vmatmul.mubr.bf16.gmra.mxu1 %v4142_v18 }
 0x624   : > { %2484 = vmatprep.mubr.bf16.mxu1 %v4144_v4 }
 0x62b   : > { %2485 = vmatmul.mubr.bf16.gmra.mxu1 %v4152_v9 }
 0x62c   : > { %2494 = vmatprep.mubr.bf16.mxu1 %v4154_v60 }
 0x633   : > { %2495 = vmatmul.mubr.bf16.gmra.mxu1 %v4162_v13 }
 0x634   : > { %2504 = vmatprep.mubr.bf16.mxu1 %v4164_v22 }
 0x63b   : > { %2505 = vmatmul.mubr.bf16.gmra.mxu1 %v4172_v41 }
 0x659   : > { %v2385_v49 = vpop.f32.mrf.mxu1 }
 0x65b   : > { %v4219_v36 = vpop.f32.mrf.mxu1 }
 0x65d   : > { %v2389_v54 = vpop.f32.mrf.mxu1 }
 0x65f   : > { %v4221_v1 = vpop.f32.mrf.mxu1 }
 0x661   : > { %v2395_v27 = vpop.f32.mrf.mxu1 }
 0x663   : > { %v2397_v18 = vpop.f32.mrf.mxu1 }
 0x665   : > { %v2399_v16 = vpop.f32.mrf.mxu1 }
 0x667   : > { %v2401_v4 = vpop.f32.mrf.mxu1 }
 0x669   : > { %v2405_v44 = vpop.f32.mrf.mxu1 }
 0x66b   : > { %v2407_v9 = vpop.f32.mrf.mxu1 }
 0x66d   : > { %v2409_v37 = vpop.f32.mrf.mxu1 }
 0x66f   : > { %v2411_v60 = vpop.f32.mrf.mxu1 }
 0x671   : > { %v2415_v30 = vpop.f32.mrf.mxu1 }
 0x673   : > { %v2417_v13 = vpop.f32.mrf.mxu1 }
 0x675   : > { %v2419_v11 = vpop.f32.mrf.mxu1 }
 0x677   : > { %v2421_v22 = vpop.f32.mrf.mxu1 }
 0x679   : > { %v2425_v10 = vpop.f32.mrf.mxu1 }
 0x67a   : > { %3171 = vrcp.f32 %v2425_v10 }
 0x67b   : > { %v2427_v41 = vpop.f32.mrf.mxu1 }
 0x67c   : > { %3173 = vrcp.f32 %v2427_v41 }
 0x67d   : > { %v2429_v48 = vpop.f32.mrf.mxu1 }
 0x67f   : > { %v2430_v5 = vpop.f32.mrf.mxu1 }
 0x687   : > { %v3172_v23 = vpop.eup %3171 }
 0x688   : > { %v2519_v35 = vmul.f32 %v3172_v23, %v4223_v7 }
 0x689   : > { %v3174_v0 = vpop.eup %3173 }
 0x68a   : > { %v2526_v28 = vrot.slane %v2519_v35, %v4225_v61  ;;  %v2520_v46 = vmul.f32 %v3174_v0, %v4223_v7 }
 0x68c   : > { %v2539_v34 = vmul.f32 %v2526_v28, %v2385_v49  ;;  %v2543_v59 = vmul.f32 %v2526_v28, %v2389_v54  ;;  %v2547_v29 = vmul.f32 %v2526_v28, %v2395_v27  ;;  %v2551_v26 = vmul.f32 %v2526_v28, %v2399_v16  ;;  %v3188_v49 = vld [vmem:[%s3451_s17 + $0x28] sm:$0xff] }
 0x68d   : > { %v2555_v6 = vmul.f32 %v2526_v28, %v2405_v44  ;;  %v2559_v38 = vmul.f32 %v2526_v28, %v2409_v37  ;;  %v2563_v17 = vmul.f32 %v2526_v28, %v2415_v30  ;;  %v2567_v50 = vmul.f32 %v2526_v28, %v2419_v11  ;;  %v3190_v27 = vld [vmem:[%s3451_s17 + $0x68] sm:$0xff] }
 0x68e   : > { %v2571_v21 = vadd.f32 %v3179_v58, %v2539_v34  ;;  %v2575_v20 = vadd.f32 %v3180_v62, %v2543_v59  ;;  %v2579_v56 = vadd.f32 %v3181_v51, %v2547_v29  ;;  %v2583_v39 = vadd.f32 %v3182_v47, %v2551_v26  ;;  %v3191_v16 = vld [vmem:[%s3451_s17 + $0x88] sm:$0xff] }
 0x68f   : > { %v2587_v57 = vadd.f32 %v3183_v32, %v2555_v6  ;;  %v2591_v33 = vadd.f32 %v3184_v52, %v2559_v38  ;;  %v2595_v43 = vadd.f32 %v3185_v8, %v2563_v17  ;;  %v2599_v15 = vadd.f32 %v3186_v63, %v2567_v50  ;;  %v3192_v44 = vld [vmem:[%s3451_s17 + $0xa8] sm:$0xff]  ;;  %v3195_v8 = vld [vmem:[%s3451_s17 + $0x10] sm:$0xff] }
 0x690   : > { %2603 = vst [vmem:[%s3453_s18] sm:$0xff] %v2571_v21  ;;  %2607 = vst [vmem:[%s3453_s18 + $0x20] sm:$0xff] %v2575_v20  ;;  %v2530_v31 = vrot.slane %v2520_v46, %v4225_v61  ;;  %v3193_v37 = vld [vmem:[%s3451_s17 + $0xc8] sm:$0xff]  ;;  %v3196_v63 = vld [vmem:[%s3451_s17 + $0x30] sm:$0xff] }
 0x691   : > { %2611 = vst [vmem:[%s3453_s18 + $0x40] sm:$0xff] %v2579_v56  ;;  %2615 = vst [vmem:[%s3453_s18 + $0x60] sm:$0xff] %v2583_v39  ;;  %v3194_v30 = vld [vmem:[%s3451_s17 + $0xe8] sm:$0xff] }
 0x692   : > { %2619 = vst [vmem:[%s3453_s18 + $0x80] sm:$0xff] %v2587_v57  ;;  %2623 = vst [vmem:[%s3453_s18 + $0xa0] sm:$0xff] %v2591_v33  ;;  %v2540_v53 = vmul.f32 %v2530_v31, %v4219_v36  ;;  %v2544_v42 = vmul.f32 %v2530_v31, %v4221_v1  ;;  %v2548_v40 = vmul.f32 %v2530_v31, %v2397_v18  ;;  %v3189_v36 = vld [vmem:[%s3451_s17 + $0x48] sm:$0xff] }
 0x693   : > { %2627 = vst [vmem:[%s3453_s18 + $0xc0] sm:$0xff] %v2595_v43  ;;  %2631 = vst [vmem:[%s3453_s18 + $0xe0] sm:$0xff] %v2599_v15  ;;  %v2552_v3 = vmul.f32 %v2530_v31, %v2401_v4  ;;  %v2556_v19 = vmul.f32 %v2530_v31, %v2407_v9  ;;  %v2560_v25 = vmul.f32 %v2530_v31, %v2411_v60 }
 0x694   : > { %v2564_v12 = vmul.f32 %v2530_v31, %v2417_v13  ;;  %v2568_v14 = vmul.f32 %v2530_v31, %v2421_v22  ;;  %v2572_v45 = vadd.f32 %v3187_v55, %v2540_v53  ;;  %v2576_v54 = vadd.f32 %v3188_v49, %v2544_v42  ;;  %v3198_v53 = vld [vmem:[%s3451_s17 + $0x70] sm:$0xff] }
 0x695   : > { %v2580_v1 = vadd.f32 %v3189_v36, %v2548_v40  ;;  %v2584_v18 = vadd.f32 %v3190_v27, %v2552_v3  ;;  %v2588_v4 = vadd.f32 %v3191_v16, %v2556_v19  ;;  %v2592_v9 = vadd.f32 %v3192_v44, %v2560_v25  ;;  %v3199_v40 = vld [vmem:[%s3451_s17 + $0x90] sm:$0xff] }
 0x696   : > { %v2596_v60 = vadd.f32 %v3193_v37, %v2564_v12  ;;  %v2600_v13 = vadd.f32 %v3194_v30, %v2568_v14  ;;  %2604 = vst [vmem:[%s3453_s18 + $0x8] sm:$0xff] %v2572_v45  ;;  %2608 = vst [vmem:[%s3453_s18 + $0x28] sm:$0xff] %v2576_v54  ;;  %v3200_v19 = vld [vmem:[%s3451_s17 + $0xb0] sm:$0xff]  ;;  %v3204_v37 = vld [vmem:[%s3451_s17 + $0x38] sm:$0xff] }
 0x697   : > { %2612 = vst [vmem:[%s3453_s18 + $0x48] sm:$0xff] %v2580_v1  ;;  %2616 = vst [vmem:[%s3453_s18 + $0x68] sm:$0xff] %v2584_v18  ;;  %v3201_v12 = vld [vmem:[%s3451_s17 + $0xd0] sm:$0xff]  ;;  %v3205_v30 = vld [vmem:[%s3451_s17 + $0x58] sm:$0xff] }
 0x698   : > { %2620 = vst [vmem:[%s3453_s18 + $0x88] sm:$0xff] %v2588_v4  ;;  %2624 = vst [vmem:[%s3453_s18 + $0xa8] sm:$0xff] %v2592_v9  ;;  %v3202_v55 = vld [vmem:[%s3451_s17 + $0xf0] sm:$0xff]  ;;  %v3203_v9 = vld [vmem:[%s3451_s17 + $0x18] sm:$0xff] }
 0x699   : > { %2628 = vst [vmem:[%s3453_s18 + $0xc8] sm:$0xff] %v2596_v60  ;;  %2632 = vst [vmem:[%s3453_s18 + $0xe8] sm:$0xff] %v2600_v13 }
 0x6db   : > { %v2466_v11 = vpop.f32.mrf.mxu1 }
 0x6dd   : > { %v2468_v22 = vpop.f32.mrf.mxu1 }
 0x6df   : > { %v2470_v10 = vpop.f32.mrf.mxu1 }
 0x6e1   : > { %v2472_v41 = vpop.f32.mrf.mxu1 }
 0x6e3   : > { %v2476_v48 = vpop.f32.mrf.mxu1 }
 0x6e5   : > { %v2478_v24 = vpop.f32.mrf.mxu1 }
 0x6e7   : > { %v2480_v5 = vpop.f32.mrf.mxu1 }
 0x6e9   : > { %v2482_v2 = vpop.f32.mrf.mxu1 }
 0x6eb   : > { %v2486_v23 = vpop.f32.mrf.mxu1 }
 0x6ed   : > { %v2488_v35 = vpop.f32.mrf.mxu1 }
 0x6ef   : > { %v2490_v0 = vpop.f32.mrf.mxu1 }
 0x6f1   : > { %v2492_v28 = vpop.f32.mrf.mxu1 }
 0x6f3   : > { %v2496_v46 = vpop.f32.mrf.mxu1 }
 0x6f5   : > { %v2498_v34 = vpop.f32.mrf.mxu1 }
 0x6f7   : > { %v2500_v59 = vpop.f32.mrf.mxu1 }
 0x6f9   : > { %v2502_v29 = vpop.f32.mrf.mxu1 }
 0x6fb   : > { %v2506_v26 = vpop.f32.mrf.mxu1 }
 0x6fc   : > { %3175 = vrcp.f32 %v2506_v26 }
 0x6fd   : > { %v2508_v6 = vpop.f32.mrf.mxu1 }
 0x6fe   : > { %3177 = vrcp.f32 %v2508_v6 }
 0x6ff   : > { %v2510_v38 = vpop.f32.mrf.mxu1 }
 0x700   : > { %v2675_v38 = vld [vmem:[%s3453_s18 + $0x40] sm:$0xff] (%p3356_p6) }
 0x701   : > { %v2511_v17 = vpop.f32.mrf.mxu1 }
 0x702   : > { %v2677_v17 = vld [vmem:[%s3453_s18 + $0x48] sm:$0xff] (%p3356_p6) }
 0x709   : > { %v3176_v50 = vpop.eup %3175 }
 0x70a   : > { %v2521_v58 = vmul.f32 %v3176_v50, %v4223_v7 }
 0x70b   : > { %v3178_v21 = vpop.eup %3177 }
 0x70c   : > { %v2534_v62 = vrot.slane %v2521_v58, %v4225_v61  ;;  %v2522_v20 = vmul.f32 %v3178_v21, %v4223_v7  ;;  %v3197_v7 = vld [vmem:[%s3451_s17 + $0x50] sm:$0xff]  ;;  %v2683_v21 = vld [vmem:[%s3453_s18 + $0x60] sm:$0xff] (%p3356_p6) }
 0x70e   : > { %v2541_v51 = vmul.f32 %v2534_v62, %v2466_v11  ;;  %v2545_v56 = vmul.f32 %v2534_v62, %v2470_v10  ;;  %v2549_v47 = vmul.f32 %v2534_v62, %v2476_v48  ;;  %v2553_v39 = vmul.f32 %v2534_v62, %v2480_v5  ;;  %v3206_v11 = vld [vmem:[%s3451_s17 + $0x78] sm:$0xff] }
 0x70f   : > { %v2557_v32 = vmul.f32 %v2534_v62, %v2486_v23  ;;  %v2561_v57 = vmul.f32 %v2534_v62, %v2490_v0  ;;  %v2565_v52 = vmul.f32 %v2534_v62, %v2496_v46  ;;  %v2569_v33 = vmul.f32 %v2534_v62, %v2500_v59  ;;  %v3207_v10 = vld [vmem:[%s3451_s17 + $0x98] sm:$0xff]  ;;  %v2659_v0 = vld [vmem:[%s3453_s18] sm:$0xff] (%p3356_p6)  ;;  %v2685_v62 = vld [vmem:[%s3453_s18 + $0x68] sm:$0xff] (%p3356_p6) }
 0x710   : > { %v2573_v43 = vadd.f32 %v3195_v8, %v2541_v51  ;;  %v2577_v15 = vadd.f32 %v3196_v63, %v2545_v56  ;;  %v2581_v31 = vadd.f32 %v3197_v7, %v2549_v47  ;;  %v2585_v42 = vadd.f32 %v3198_v53, %v2553_v39  ;;  %v3208_v48 = vld [vmem:[%s3451_s17 + $0xb8] sm:$0xff]  ;;  %v2667_v59 = vld [vmem:[%s3453_s18 + $0x20] sm:$0xff] (%p3356_p6)  ;;  %v2693_v47 = vld [vmem:[%s3453_s18 + $0x88] sm:$0xff] (%p3356_p6) }
 0x711   : > { %v2589_v3 = vadd.f32 %v3199_v40, %v2557_v32  ;;  %v2593_v25 = vadd.f32 %v3200_v19, %v2561_v57  ;;  %v2597_v14 = vadd.f32 %v3201_v12, %v2565_v52  ;;  %v2601_v45 = vadd.f32 %v3202_v55, %v2569_v33  ;;  %v3209_v5 = vld [vmem:[%s3451_s17 + $0xd8] sm:$0xff]  ;;  %v2691_v56 = vld [vmem:[%s3453_s18 + $0x80] sm:$0xff] (%p3356_p6)  ;;  %v2701_v52 = vld [vmem:[%s3453_s18 + $0xa8] sm:$0xff] (%p3356_p6) }
 0x712   : > { %2605 = vst [vmem:[%s3453_s18 + $0x10] sm:$0xff] %v2573_v43  ;;  %2609 = vst [vmem:[%s3453_s18 + $0x30] sm:$0xff] %v2577_v15  ;;  %v2538_v49 = vrot.slane %v2522_v20, %v4225_v61  ;;  %v3210_v23 = vld [vmem:[%s3451_s17 + $0xf8] sm:$0xff]  ;;  %s2938_s17 = sshll.u32 (%p3356_p6), %s3249_s25, 2  ;;  %v2699_v57 = vld [vmem:[%s3453_s18 + $0xa0] sm:$0xff] (%p3356_p6) }
 0x713   : > { %2613 = vst [vmem:[%s3453_s18 + $0x50] sm:$0xff] %v2581_v31  ;;  %2617 = vst [vmem:[%s3453_s18 + $0x70] sm:$0xff] %v2585_v42  ;;  %s2644_s9 = sadd.s32 (%p3356_p6), %s2939_s22, %s2938_s17  ;;  %v2707_v43 = vld [vmem:[%s3453_s18 + $0xc0] sm:$0xff] (%p3356_p6)  ;;  %v2709_v63 = vld [vmem:[%s3453_s18 + $0xc8] sm:$0xff] (%p3356_p6) }
 0x714   : > { %2621 = vst [vmem:[%s3453_s18 + $0x90] sm:$0xff] %v2589_v3  ;;  %2625 = vst [vmem:[%s3453_s18 + $0xb0] sm:$0xff] %v2593_v25  ;;  %v2542_v54 = vmul.f32 %v2538_v49, %v2468_v22  ;;  %v2546_v36 = vmul.f32 %v2538_v49, %v2472_v41  ;;  %v2550_v1 = vmul.f32 %v2538_v49, %v2478_v24  ;;  %s2940_s7 = sshll.u32 (%p3356_p6), %s2644_s9, 3  ;;  %v2715_v31 = vld [vmem:[%s3453_s18 + $0xe0] sm:$0xff] (%p3356_p6)  ;;  %v2717_v53 = vld [vmem:[%s3453_s18 + $0xe8] sm:$0xff] (%p3356_p6) }
 0x715   : > { %2629 = vst [vmem:[%s3453_s18 + $0xd0] sm:$0xff] %v2597_v14  ;;  %2633 = vst [vmem:[%s3453_s18 + $0xf0] sm:$0xff] %v2601_v45  ;;  %v2554_v27 = vmul.f32 %v2538_v49, %v2482_v2  ;;  %v2558_v18 = vmul.f32 %v2538_v49, %v2488_v35  ;;  %v2562_v16 = vmul.f32 %v2538_v49, %v2492_v28  ;;  %v2661_v28 = vld [vmem:[%s3453_s18 + $0x8] sm:$0xff] (%p3356_p6)  ;;  %s4317_s11 = scalar_lea.vmem (%p3356_p6), %s4401_s6, %s2940_s7 }
 0x716   : > { %v2566_v4 = vmul.f32 %v2538_v49, %v2498_v34  ;;  %v2570_v44 = vmul.f32 %v2538_v49, %v2502_v29  ;;  %v2574_v61 = vadd.f32 %v3203_v9, %v2542_v54  ;;  %v2578_v60 = vadd.f32 %v3204_v37, %v2546_v36  ;;  %v2669_v29 = vld [vmem:[%s3453_s18 + $0x28] sm:$0xff] (%p3356_p6)  ;;  %2660 = vst [vmem:[%s4317_s11] sm:$0xff] (%p3356_p6), %v2659_v0 }
 0x717   : > { %v2582_v13 = vadd.f32 %v3205_v30, %v2550_v1  ;;  %v2586_v22 = vadd.f32 %v3206_v11, %v2554_v27  ;;  %v2590_v41 = vadd.f32 %v3207_v10, %v2558_v18  ;;  %v2594_v24 = vadd.f32 %v3208_v48, %v2562_v16  ;;  %2641 = sbr.rel (!%p3356_p6) target bundleno = 1835 (0x72b), region = 75  ;;  %2662 = vst [vmem:[%s4317_s11 + $0x8] sm:$0xff] (%p3356_p6), %v2661_v28 }
 0x718   : > { %v2598_v2 = vadd.f32 %v3209_v5, %v2566_v4  ;;  %v2602_v35 = vadd.f32 %v3210_v23, %v2570_v44  ;;  %2606 = vst [vmem:[%s3453_s18 + $0x18] sm:$0xff] %v2574_v61  ;;  %2610 = vst [vmem:[%s3453_s18 + $0x38] sm:$0xff] %v2578_v60 }
 0x719   : > { %2614 = vst [vmem:[%s3453_s18 + $0x58] sm:$0xff] %v2582_v13  ;;  %2618 = vst [vmem:[%s3453_s18 + $0x78] sm:$0xff] %v2586_v22  ;;  %v2663_v46 = vld [vmem:[%s3453_s18 + $0x10] sm:$0xff] (%p3356_p6) }
 0x71a   : > { %2622 = vst [vmem:[%s3453_s18 + $0x98] sm:$0xff] %v2590_v41  ;;  %2626 = vst [vmem:[%s3453_s18 + $0xb8] sm:$0xff] %v2594_v24  ;;  %v2671_v26 = vld [vmem:[%s3453_s18 + $0x30] sm:$0xff] (%p3356_p6) }
 0x71b   : > { %2630 = vst [vmem:[%s3453_s18 + $0xd8] sm:$0xff] %v2598_v2  ;;  %2634 = vst [vmem:[%s3453_s18 + $0xf8] sm:$0xff] %v2602_v35  ;;  %v2679_v50 = vld [vmem:[%s3453_s18 + $0x50] sm:$0xff] (%p3356_p6) }
 0x71c   : > { %2664 = vst [vmem:[%s4317_s11 + $0x10] sm:$0xff] %v2663_v46  ;;  %2668 = vst [vmem:[%s4317_s11 + $0x40] sm:$0xff] %v2667_v59  ;;  %v2687_v20 = vld [vmem:[%s3453_s18 + $0x70] sm:$0xff] }
 0x71d   : > { %2670 = vst [vmem:[%s4317_s11 + $0x48] sm:$0xff] %v2669_v29  ;;  %2672 = vst [vmem:[%s4317_s11 + $0x50] sm:$0xff] %v2671_v26  ;;  %v2695_v39 = vld [vmem:[%s3453_s18 + $0x90] sm:$0xff] }
 0x71e   : > { %2676 = vst [vmem:[%s4317_s11 + $0x80] sm:$0xff] %v2675_v38  ;;  %2678 = vst [vmem:[%s4317_s11 + $0x88] sm:$0xff] %v2677_v17  ;;  %v2703_v33 = vld [vmem:[%s3453_s18 + $0xb0] sm:$0xff] }
 0x71f   : > { %v2665_v34 = vld [vmem:[%s3453_s18 + $0x18] sm:$0xff]  ;;  %2680 = vst [vmem:[%s4317_s11 + $0x90] sm:$0xff] %v2679_v50  ;;  %2684 = vst [vmem:[%s4317_s11 + $0xc0] sm:$0xff] %v2683_v21  ;;  %v2711_v15 = vld [vmem:[%s3453_s18 + $0xd0] sm:$0xff] }
 0x720   : > { %v2673_v6 = vld [vmem:[%s3453_s18 + $0x38] sm:$0xff]  ;;  %2666 = vst [vmem:[%s4317_s11 + $0x18] sm:$0xff] %v2665_v34  ;;  %2686 = vst [vmem:[%s4317_s11 + $0xc8] sm:$0xff] %v2685_v62  ;;  %v2719_v42 = vld [vmem:[%s3453_s18 + $0xf0] sm:$0xff] }
 0x721   : > { %v2681_v58 = vld [vmem:[%s3453_s18 + $0x58] sm:$0xff]  ;;  %2674 = vst [vmem:[%s4317_s11 + $0x58] sm:$0xff] %v2673_v6  ;;  %2688 = vst [vmem:[%s4317_s11 + $0xd0] sm:$0xff] %v2687_v20 }
 0x722   : > { %2682 = vst [vmem:[%s4317_s11 + $0x98] sm:$0xff] %v2681_v58  ;;  %v2689_v51 = vld [vmem:[%s3453_s18 + $0x78] sm:$0xff]  ;;  %2692 = vst [vmem:[%s4317_s11 + $0x100] sm:$0xff] %v2691_v56 }
 0x723   : > { %2690 = vst [vmem:[%s4317_s11 + $0xd8] sm:$0xff] %v2689_v51  ;;  %2694 = vst [vmem:[%s4317_s11 + $0x108] sm:$0xff] %v2693_v47  ;;  %v2697_v32 = vld [vmem:[%s3453_s18 + $0x98] sm:$0xff] }
 0x724   : > { %2696 = vst [vmem:[%s4317_s11 + $0x110] sm:$0xff] %v2695_v39  ;;  %2698 = vst [vmem:[%s4317_s11 + $0x118] sm:$0xff] %v2697_v32  ;;  %v2705_v8 = vld [vmem:[%s3453_s18 + $0xb8] sm:$0xff] }
 0x725   : > { %2700 = vst [vmem:[%s4317_s11 + $0x140] sm:$0xff] %v2699_v57  ;;  %2702 = vst [vmem:[%s4317_s11 + $0x148] sm:$0xff] %v2701_v52  ;;  %v2713_v7 = vld [vmem:[%s3453_s18 + $0xd8] sm:$0xff] }
 0x726   : > { %2704 = vst [vmem:[%s4317_s11 + $0x150] sm:$0xff] %v2703_v33  ;;  %2706 = vst [vmem:[%s4317_s11 + $0x158] sm:$0xff] %v2705_v8  ;;  %v2721_v40 = vld [vmem:[%s3453_s18 + $0xf8] sm:$0xff] }
 0x727   : > { %2708 = vst [vmem:[%s4317_s11 + $0x180] sm:$0xff] %v2707_v43  ;;  %2710 = vst [vmem:[%s4317_s11 + $0x188] sm:$0xff] %v2709_v63 }
 0x728   : > { %2712 = vst [vmem:[%s4317_s11 + $0x190] sm:$0xff] %v2711_v15  ;;  %2714 = vst [vmem:[%s4317_s11 + $0x198] sm:$0xff] %v2713_v7 }
 0x729   : > { %2716 = vst [vmem:[%s4317_s11 + $0x1c0] sm:$0xff] %v2715_v31  ;;  %2718 = vst [vmem:[%s4317_s11 + $0x1c8] sm:$0xff] %v2717_v53 }
 0x72a   : > { %2720 = vst [vmem:[%s4317_s11 + $0x1d0] sm:$0xff] %v2719_v42  ;;  %2722 = vst [vmem:[%s4317_s11 + $0x1d8] sm:$0xff] %v2721_v40 }
 0x72b PF: > { %s17_s29 = sadd.s32 1, %s3265_s29   ;;  %s4595_s23 = smov %s3245_s24 }
 0x72c   : > { %p14_p0 = scmp.ge.s32.totalorder %s17_s29, 6   ;;  %s4596_s24 = smov %s3364_s13 }
 0x72d   : > { %s4597_s25 = smov %s3257_s27  ;;  %s4598_s26 = smov %s3261_s28 }
 0x72e   : > { %s4599_s27 = smov %s4602_s5  ;;  %s4600_s28 = smov %s4606_s30 }
 0x72f   :  { %16 = sbr.rel (!%p14_p0) target bundleno = 6 (0x6), region = 132 }

</bundles_post_ra>
